<compile_context>
chip_gen: v7x
topology: tpu7x:2x2x1
jax: 0.10.0
libtpu: 0.0.40
codegen_flags: <defaults>
</compile_context>

<pallas_src>
import functools

import jax
import jax.numpy as jnp
from jax.experimental import pallas as pl
from jax.experimental.pallas import tpu as pltpu

NEG_SLOPE = 0.01  # nn.LeakyReLU default negative_slope
LANE = 128        # TPU lane width


def _round_up(n, m):
    return ((n + m - 1) // m) * m


def _vmem_capacity_bytes():
    """Per-core VMEM capacity (64 MiB on v7x, 128 MiB on v5e/v6e)."""
    try:
        return int(pltpu.get_tpu_info().vmem_capacity_bytes)
    except Exception:
        return 64 << 20  # conservative fallback valid on every generation


# -----------------------------------------------------------------------------
# Kernel
# -----------------------------------------------------------------------------
def _skip_head_mlp_kernel(n_hidden, f, f_p, out_features, offs, *refs):
    """refs layout:
       [0]                x tile           (tb, F)   -- unpadded minor dim
       [1 .. n]           hidden weights   (d_{i-1,p}, d_{i,p})  padded, transposed
       [1+n .. 2n]        hidden biases    (1, d_{i,p})          f32
       [2n+1]             head weight      (penult_p, o_p)       padded, transposed
       [2n+2]             head bias        (1, o_p)              f32
       [2n+3]             output tile      (tb, out_features)    unpadded minor dim
       [2n+4]             concat slab      (tb, penult_p)        VMEM scratch
    """
    x_ref = refs[0]
    w_refs = refs[1:1 + n_hidden]
    b_refs = refs[1 + n_hidden:1 + 2 * n_hidden]
    wh_ref = refs[1 + 2 * n_hidden]
    bh_ref = refs[2 + 2 * n_hidden]
    out_ref = refs[3 + 2 * n_hidden]
    slab = refs[4 + 2 * n_hidden]

    tb = x_ref.shape[0]
    cdt = slab.dtype  # dtype fed to the MXU: f32 (exact path) or bf16 (fast path)

    xf = x_ref[...].astype(jnp.float32)
    if f_p > f:
        # Lane-pad the input inside VMEM only: zero the whole 128-aligned
        # segment-0 block (every step -> safe when the "parallel" grid axis is
        # split across TensorCores), then overwrite the live lanes.
        slab[:, 0:f_p] = jnp.zeros((tb, f_p), cdt)
        slab[:, 0:f] = xf.astype(cdt)
        h = slab[:, 0:f_p].astype(jnp.float32)      # zero-padded (tb, f_p)
    else:
        slab[:, 0:f_p] = xf.astype(cdt)
        h = xf

    for i in range(n_hidden):
        z = jnp.dot(h.astype(w_refs[i].dtype), w_refs[i][...],
                    preferred_element_type=jnp.float32)
        z = z + b_refs[i][...].astype(jnp.float32)
        h = jnp.maximum(z, NEG_SLOPE * z)           # LeakyReLU, f32 VPU path
        slab[:, offs[i + 1]:offs[i + 2]] = h.astype(cdt)   # 128-aligned segment

    # Single large-K head matmul over the staged "concat" slab.
    acc = jnp.dot(slab[...], wh_ref[...], preferred_element_type=jnp.float32)
    acc = acc + bh_ref[...].astype(jnp.float32)
    out_ref[...] = acc[:, :out_features].astype(out_ref.dtype)


# -----------------------------------------------------------------------------
# Parameter preparation (one-time): pad every feature dim up to a multiple of
# `lane` with zeros (padded rows/cols contribute exactly nothing).
# `lane`=128 matches the vreg; MXU-bound configs on v6e/v7x may pass 256 to fill
# the 256-wide MXU tiles.  weight_dtype=jnp.bfloat16 enables the fast MXU path.
# -----------------------------------------------------------------------------
def prepare_params(params, in_features, hidden_sizes, out_features,
                   lane=LANE, weight_dtype=jnp.float32):
    ws, bs, wh, bh = params
    dims = [in_features] + list(hidden_sizes)
    dims_p = [_round_up(d, lane) for d in dims]
    o_p = _round_up(out_features, lane)

    ws_p, bs_p = [], []
    for i, (w, b) in enumerate(zip(ws, bs)):
        wp = jnp.zeros((dims_p[i], dims_p[i + 1]), jnp.float32)
        wp = wp.at[:w.shape[0], :w.shape[1]].set(w)
        bp = jnp.zeros((1, dims_p[i + 1]), jnp.float32).at[:, :b.shape[1]].set(b)
        ws_p.append(wp.astype(weight_dtype))
        bs_p.append(bp)                       # biases stay f32 (added post-matmul)

    penult_p = sum(dims_p)
    wh_p = jnp.zeros((penult_p, o_p), jnp.float32)
    off_src = off_dst = 0
    for d, dp in zip(dims, dims_p):
        wh_p = wh_p.at[off_dst:off_dst + d, :out_features].set(wh[off_src:off_src + d, :])
        off_src += d
        off_dst += dp
    bh_p = jnp.zeros((1, o_p), jnp.float32).at[:, :out_features].set(bh)
    return (ws_p, bs_p, wh_p.astype(weight_dtype), bh_p), dims_p, o_p


# -----------------------------------------------------------------------------
# Wrapper
# -----------------------------------------------------------------------------
def skip_head_mlp(x, padded_params, dims_p, out_features, o_p, *, tb=None):
    ws_p, bs_p, wh_p, bh_p = padded_params
    n_hidden = len(ws_p)
    B, F = x.shape
    f_p = dims_p[0]
    penult_p = sum(dims_p)
    x_item = jnp.dtype(x.dtype).itemsize
    w_item = jnp.dtype(wh_p.dtype).itemsize

    weight_bytes = (sum(int(w.size) * jnp.dtype(w.dtype).itemsize for w in ws_p)
                    + sum(int(b.size) * jnp.dtype(b.dtype).itemsize for b in bs_p)
                    + int(wh_p.size) * w_item
                    + int(bh_p.size) * jnp.dtype(bh_p.dtype).itemsize)

    # --- generation-aware batch tile & VMEM budget ---------------------------
    vmem_cap = _vmem_capacity_bytes()
    budget = int(0.75 * vmem_cap)            # ~48 MiB on v7x, ~96 MiB on v5e/v6e
    max_hidden = max(dims_p[1:], default=0)
    per_row = (2 * F * x_item                # x tile, double-buffered
               + 2 * out_features * x_item   # out tile, double-buffered
               + penult_p * w_item           # concat slab scratch
               + (2 * f_p + o_p + max_hidden) * 4)   # f32 temporaries (h, acc, ...)
    tb_mem = max((budget - 2 * weight_bytes) // per_row, 8)
    tb_mc = _round_up(-(-B // 2), 8)         # >= 2 grid steps -> both v7x TCs get work
    tb = tb_mem if tb is None else tb
    tb = max(8, (min(tb, tb_mc, _round_up(B, 8), 2048) // 8) * 8)
    grid = (pl.cdiv(B, tb),)

    # 128-aligned lane offsets of each concat segment inside the slab.
    offs = [0]
    for d in dims_p:
        offs.append(offs[-1] + d)
    offs = tuple(offs)

    # Advisory cost estimate with TRUE (unpadded) x / out byte counts.
    flops = 2 * B * penult_p * o_p
    for i in range(n_hidden):
        flops += 2 * B * dims_p[i] * dims_p[i + 1]
    bytes_accessed = B * F * x_item + B * out_features * x_item + weight_bytes
    cost = pl.CostEstimate(flops=flops, transcendentals=0, bytes_accessed=bytes_accessed)

    kernel = functools.partial(_skip_head_mlp_kernel, n_hidden, F, f_p,
                               out_features, offs)

    def build(weight_mode):
        def wspec(shape):
            if weight_mode is None:
                return pl.BlockSpec(shape, lambda i: (0, 0))
            return pl.BlockSpec(shape, lambda i: (0, 0), pipeline_mode=weight_mode)
        in_specs = [pl.BlockSpec((tb, F), lambda i: (i, 0))]   # contiguous HBM rows
        in_specs += [wspec(w.shape) for w in ws_p]
        in_specs += [wspec(b.shape) for b in bs_p]
        in_specs += [wspec(wh_p.shape), wspec(bh_p.shape)]
        return pl.pallas_call(
            kernel,
            out_shape=jax.ShapeDtypeStruct((B, out_features), x.dtype),
            grid=grid,
            in_specs=in_specs,
            out_specs=pl.BlockSpec((tb, out_features), lambda i: (i, 0)),
            scratch_shapes=[pltpu.VMEM((tb, penult_p), wh_p.dtype)],
            compiler_params=pltpu.CompilerParams(
                dimension_semantics=("parallel",),
                vmem_limit_bytes=budget),
            cost_estimate=cost,
        )

    args = (x, *ws_p, *bs_p, wh_p, bh_p)
    try:
        # Grid-invariant weights/biases (constant index_map, never re-fetched):
        # single-buffer them to halve their resident VMEM footprint.
        return build(pl.Buffered(1))(*args)
    except Exception:
        # Buffered(1) not supported by this jax/Mosaic version on the outer
        # pipeline -> fall back to default double-buffering (still correct).
        return build(None)(*args)


# -----------------------------------------------------------------------------
# Init (matches SkipHeadMLP.__init__: xavier_uniform weights, zero biases;
# weights stored transposed as [in, out] so the kernel computes x @ W).
# -----------------------------------------------------------------------------
def xavier_uniform(key, fan_in, fan_out):
    bound = (6.0 / (fan_in + fan_out)) ** 0.5
    return jax.random.uniform(key, (fan_in, fan_out), jnp.float32, -bound, bound)


def init_params(key, in_features, out_features, hidden_sizes):
    dims = [in_features] + list(hidden_sizes)
    keys = jax.random.split(key, len(hidden_sizes) + 1)
    ws, bs = [], []
    for i, h in enumerate(hidden_sizes):
        ws.append(xavier_uniform(keys[i], dims[i], h))
        bs.append(jnp.zeros((1, h), jnp.float32))
    penult = in_features + sum(hidden_sizes)
    wh = xavier_uniform(keys[-1], penult, out_features)
    bh = jnp.zeros((1, out_features), jnp.float32)
    return ws, bs, wh, bh


def reference(x, params):
    ws, bs, wh, bh = params
    layers = [x]
    h = x
    for w, b in zip(ws, bs):
        z = h @ w + b
        h = jnp.where(z > 0, z, NEG_SLOPE * z)
        layers.append(h)
    cat = jnp.concatenate(layers, axis=-1)
    return cat @ wh + bh


if __name__ == "__main__":
    in_features, out_features = 16, 8
    hidden_sizes = (32, 24)
    batch = 200  # exercises a ragged last batch tile and a 2-step "parallel" grid

    key = jax.random.PRNGKey(0)
    kx, kp = jax.random.split(key)
    x = jax.random.normal(kx, (batch, in_features), jnp.float32)
    params = init_params(kp, in_features, out_features, hidden_sizes)
    ref = reference(x, params)

    # Exact-semantics f32 path.
    pp32, dims_p, o_p = prepare_params(params, in_features, hidden_sizes, out_features)
    out32 = skip_head_mlp(x, pp32, dims_p, out_features, o_p)
    out32 = jax.block_until_ready(out32)
    assert out32.shape == (batch, out_features)
    assert jnp.allclose(out32, ref, rtol=5e-5, atol=5e-5), "f32 mismatch vs reference"

    # bf16-weight fast MXU path (f32 accumulation; loose tolerance by construction).
    ppbf, dims_pb, o_pb = prepare_params(params, in_features, hidden_sizes,
                                         out_features, weight_dtype=jnp.bfloat16)
    outbf = skip_head_mlp(x, ppbf, dims_pb, out_features, o_pb)
    outbf = jax.block_until_ready(outbf)
    assert outbf.shape == (batch, out_features)
    assert jnp.allclose(outbf, ref, rtol=1e-1, atol=1e-1), "bf16 mismatch vs reference"

    print("KERNEL_OK")
</pallas_src>

<mosaic_0001>
module attributes {stable_mosaic.version = 11 : i64} {
  func.func @_skip_head_mlp_kernel(%arg0: i32, %arg1: memref<104x16xf32, #tpu.memory_space<vmem>>, %arg2: memref<128x128xf32, #tpu.memory_space<vmem>>, %arg3: memref<128x128xf32, #tpu.memory_space<vmem>>, %arg4: memref<1x128xf32, #tpu.memory_space<vmem>>, %arg5: memref<1x128xf32, #tpu.memory_space<vmem>>, %arg6: memref<384x128xf32, #tpu.memory_space<vmem>>, %arg7: memref<1x128xf32, #tpu.memory_space<vmem>>, %arg8: memref<104x8xf32, #tpu.memory_space<vmem>>, %arg9: memref<104x384xf32, #tpu.memory_space<vmem>>) attributes {dimension_semantics = [#tpu.dimension_semantics<parallel>], iteration_bounds = array<i64: 2>, scalar_prefetch = 0 : i64, scratch_operands = 1 : i64, tpu.core_type = #tpu.core_type<tc>, window_params = [{transform_indices = @transform_0, window_bounds = array<i64: 104, 16>}, {pipeline_mode = #tpu.pipeline_mode<synchronous>, transform_indices = @transform_1, window_bounds = array<i64: 128, 128>}, {pipeline_mode = #tpu.pipeline_mode<synchronous>, transform_indices = @transform_2, window_bounds = array<i64: 128, 128>}, {pipeline_mode = #tpu.pipeline_mode<synchronous>, transform_indices = @transform_3, window_bounds = array<i64: 1, 128>}, {pipeline_mode = #tpu.pipeline_mode<synchronous>, transform_indices = @transform_4, window_bounds = array<i64: 1, 128>}, {pipeline_mode = #tpu.pipeline_mode<synchronous>, transform_indices = @transform_5, window_bounds = array<i64: 384, 128>}, {pipeline_mode = #tpu.pipeline_mode<synchronous>, transform_indices = @transform_6, window_bounds = array<i64: 1, 128>}, {transform_indices = @transform_7, window_bounds = array<i64: 104, 8>}]} {
    %c0 = arith.constant 0 : index
    %c0_0 = arith.constant 0 : index
    %0 = vector.load %arg1[%c0, %c0_0] : memref<104x16xf32, #tpu.memory_space<vmem>>, vector<104x16xf32>
    %cst = arith.constant 0.000000e+00 : f32
    %1 = vector.broadcast %cst : f32 to vector<104x128xf32>
    %c0_1 = arith.constant 0 : index
    %c0_2 = arith.constant 0 : index
    %2 = vector.load %arg9[%c0_1, %c0_2] : memref<104x384xf32, #tpu.memory_space<vmem>>, vector<104x128xf32>
    tpu.vector_store %arg9[%c0_1, %c0_2], %1 {strides = array<i32>} : memref<104x384xf32, #tpu.memory_space<vmem>>, vector<104x128xf32>,
    %c0_3 = arith.constant 0 : index
    %c0_4 = arith.constant 0 : index
    %3 = vector.load %arg9[%c0_3, %c0_4] : memref<104x384xf32, #tpu.memory_space<vmem>>, vector<104x16xf32>
    tpu.vector_store %arg9[%c0_3, %c0_4], %0 {strides = array<i32>} : memref<104x384xf32, #tpu.memory_space<vmem>>, vector<104x16xf32>,
    %c0_5 = arith.constant 0 : index
    %c0_6 = arith.constant 0 : index
    %4 = vector.load %arg9[%c0_5, %c0_6] : memref<104x384xf32, #tpu.memory_space<vmem>>, vector<104x128xf32>
    %c0_7 = arith.constant 0 : index
    %c0_8 = arith.constant 0 : index
    %5 = vector.load %arg2[%c0_7, %c0_8] : memref<128x128xf32, #tpu.memory_space<vmem>>, vector<128x128xf32>
    %cst_9 = arith.constant dense<0.000000e+00> : vector<104x128xf32>
    %6 = tpu.matmul %4, %5, %cst_9 {dimension_numbers = #tpu.dot_dimension_numbers<[1], [0], [0], [1], [0, 0, 1, 1], [], []>} : vector<104x128xf32>, vector<128x128xf32>, vector<104x128xf32> -> vector<104x128xf32>
    %c0_10 = arith.constant 0 : index
    %c0_11 = arith.constant 0 : index
    %7 = vector.load %arg4[%c0_10, %c0_11] : memref<1x128xf32, #tpu.memory_space<vmem>>, vector<1x128xf32>
    %8 = vector.broadcast %7 : vector<1x128xf32> to vector<104x128xf32>
    %9 = arith.addf %6, %8 : vector<104x128xf32>
    %cst_12 = arith.constant 0.00999999977 : f32
    %10 = vector.broadcast %cst_12 : f32 to vector<104x128xf32>
    %11 = arith.mulf %10, %9 : vector<104x128xf32>
    %12 = arith.maximumf %9, %11 : vector<104x128xf32>
    %c0_13 = arith.constant 0 : index
    %c128 = arith.constant 128 : index
    %13 = vector.load %arg9[%c0_13, %c128] : memref<104x384xf32, #tpu.memory_space<vmem>>, vector<104x128xf32>
    tpu.vector_store %arg9[%c0_13, %c128], %12 {strides = array<i32>} : memref<104x384xf32, #tpu.memory_space<vmem>>, vector<104x128xf32>,
    %c0_14 = arith.constant 0 : index
    %c0_15 = arith.constant 0 : index
    %14 = vector.load %arg3[%c0_14, %c0_15] : memref<128x128xf32, #tpu.memory_space<vmem>>, vector<128x128xf32>
    %cst_16 = arith.constant dense<0.000000e+00> : vector<104x128xf32>
    %15 = tpu.matmul %12, %14, %cst_16 {dimension_numbers = #tpu.dot_dimension_numbers<[1], [0], [0], [1], [0, 0, 1, 1], [], []>} : vector<104x128xf32>, vector<128x128xf32>, vector<104x128xf32> -> vector<104x128xf32>
    %c0_17 = arith.constant 0 : index
    %c0_18 = arith.constant 0 : index
    %16 = vector.load %arg5[%c0_17, %c0_18] : memref<1x128xf32, #tpu.memory_space<vmem>>, vector<1x128xf32>
    %17 = vector.broadcast %16 : vector<1x128xf32> to vector<104x128xf32>
    %18 = arith.addf %15, %17 : vector<104x128xf32>
    %cst_19 = arith.constant 0.00999999977 : f32
    %19 = vector.broadcast %cst_19 : f32 to vector<104x128xf32>
    %20 = arith.mulf %19, %18 : vector<104x128xf32>
    %21 = arith.maximumf %18, %20 : vector<104x128xf32>
    %c0_20 = arith.constant 0 : index
    %c256 = arith.constant 256 : index
    %22 = vector.load %arg9[%c0_20, %c256] : memref<104x384xf32, #tpu.memory_space<vmem>>, vector<104x128xf32>
    tpu.vector_store %arg9[%c0_20, %c256], %21 {strides = array<i32>} : memref<104x384xf32, #tpu.memory_space<vmem>>, vector<104x128xf32>,
    %c0_21 = arith.constant 0 : index
    %c0_22 = arith.constant 0 : index
    %23 = vector.load %arg9[%c0_21, %c0_22] : memref<104x384xf32, #tpu.memory_space<vmem>>, vector<104x384xf32>
    %c0_23 = arith.constant 0 : index
    %c0_24 = arith.constant 0 : index
    %24 = vector.load %arg6[%c0_23, %c0_24] : memref<384x128xf32, #tpu.memory_space<vmem>>, vector<384x128xf32>
    %cst_25 = arith.constant dense<0.000000e+00> : vector<104x128xf32>
    %25 = tpu.matmul %23, %24, %cst_25 {dimension_numbers = #tpu.dot_dimension_numbers<[1], [0], [0], [1], [0, 0, 1, 1], [], []>} : vector<104x384xf32>, vector<384x128xf32>, vector<104x128xf32> -> vector<104x128xf32>
    %c0_26 = arith.constant 0 : index
    %c0_27 = arith.constant 0 : index
    %26 = vector.load %arg7[%c0_26, %c0_27] : memref<1x128xf32, #tpu.memory_space<vmem>>, vector<1x128xf32>
    %27 = vector.broadcast %26 : vector<1x128xf32> to vector<104x128xf32>
    %28 = arith.addf %25, %27 : vector<104x128xf32>
    %29 = vector.extract_strided_slice %28 {offsets = [0, 0], sizes = [104, 8], strides = [1, 1]} : vector<104x128xf32> to vector<104x8xf32>
    %c0_28 = arith.constant 0 : index
    %c0_29 = arith.constant 0 : index
    %30 = vector.load %arg8[%c0_28, %c0_29] : memref<104x8xf32, #tpu.memory_space<vmem>>, vector<104x8xf32>
    tpu.vector_store %arg8[%c0_28, %c0_29], %29 {strides = array<i32>} : memref<104x8xf32, #tpu.memory_space<vmem>>, vector<104x8xf32>,
    return
  }
  func.func @transform_0(%arg0: i32) -> (i32, i32) {
    %c0_i32 = arith.constant 0 : i32
    %c0_i32_0 = arith.constant 0 : i32
    return %arg0, %c0_i32 : i32, i32
  }
  func.func @transform_1(%arg0: i32) -> (i32, i32) {
    %c0_i32 = arith.constant 0 : i32
    %c0_i32_0 = arith.constant 0 : i32
    %c0_i32_1 = arith.constant 0 : i32
    return %c0_i32, %c0_i32_0 : i32, i32
  }
  func.func @transform_2(%arg0: i32) -> (i32, i32) {
    %c0_i32 = arith.constant 0 : i32
    %c0_i32_0 = arith.constant 0 : i32
    %c0_i32_1 = arith.constant 0 : i32
    return %c0_i32, %c0_i32_0 : i32, i32
  }
  func.func @transform_3(%arg0: i32) -> (i32, i32) {
    %c0_i32 = arith.constant 0 : i32
    %c0_i32_0 = arith.constant 0 : i32
    %c0_i32_1 = arith.constant 0 : i32
    return %c0_i32, %c0_i32_0 : i32, i32
  }
  func.func @transform_4(%arg0: i32) -> (i32, i32) {
    %c0_i32 = arith.constant 0 : i32
    %c0_i32_0 = arith.constant 0 : i32
    %c0_i32_1 = arith.constant 0 : i32
    return %c0_i32, %c0_i32_0 : i32, i32
  }
  func.func @transform_5(%arg0: i32) -> (i32, i32) {
    %c0_i32 = arith.constant 0 : i32
    %c0_i32_0 = arith.constant 0 : i32
    %c0_i32_1 = arith.constant 0 : i32
    return %c0_i32, %c0_i32_0 : i32, i32
  }
  func.func @transform_6(%arg0: i32) -> (i32, i32) {
    %c0_i32 = arith.constant 0 : i32
    %c0_i32_0 = arith.constant 0 : i32
    %c0_i32_1 = arith.constant 0 : i32
    return %c0_i32, %c0_i32_0 : i32, i32
  }
  func.func @transform_7(%arg0: i32) -> (i32, i32) {
    %c0_i32 = arith.constant 0 : i32
    %c0_i32_0 = arith.constant 0 : i32
    return %arg0, %c0_i32 : i32, i32
  }
}

module attributes {stable_mosaic.version = 11 : i64} {
  func.func @_skip_head_mlp_kernel(%arg0: i32, %arg1: memref<104x16xf32, #tpu.memory_space<vmem>>, %arg2: memref<128x128xf32, #tpu.memory_space<vmem>>, %arg3: memref<128x128xf32, #tpu.memory_space<vmem>>, %arg4: memref<1x128xf32, #tpu.memory_space<vmem>>, %arg5: memref<1x128xf32, #tpu.memory_space<vmem>>, %arg6: memref<384x128xf32, #tpu.memory_space<vmem>>, %arg7: memref<1x128xf32, #tpu.memory_space<vmem>>, %arg8: memref<104x8xf32, #tpu.memory_space<vmem>>, %arg9: memref<104x384xf32, #tpu.memory_space<vmem>>) attributes {dimension_semantics = [#tpu.dimension_semantics<parallel>], iteration_bounds = array<i64: 2>, scalar_prefetch = 0 : i64, scratch_operands = 1 : i64, tpu.core_type = #tpu.core_type<tc>, window_params = [{transform_indices = @transform_0, window_bounds = array<i64: 104, 16>}, {pipeline_mode = #tpu.pipeline_mode<synchronous>, transform_indices = @transform_1, window_bounds = array<i64: 128, 128>}, {pipeline_mode = #tpu.pipeline_mode<synchronous>, transform_indices = @transform_2, window_bounds = array<i64: 128, 128>}, {pipeline_mode = #tpu.pipeline_mode<synchronous>, transform_indices = @transform_3, window_bounds = array<i64: 1, 128>}, {pipeline_mode = #tpu.pipeline_mode<synchronous>, transform_indices = @transform_4, window_bounds = array<i64: 1, 128>}, {pipeline_mode = #tpu.pipeline_mode<synchronous>, transform_indices = @transform_5, window_bounds = array<i64: 384, 128>}, {pipeline_mode = #tpu.pipeline_mode<synchronous>, transform_indices = @transform_6, window_bounds = array<i64: 1, 128>}, {transform_indices = @transform_7, window_bounds = array<i64: 104, 8>}]} {
    %c0 = arith.constant 0 : index
    %c0_0 = arith.constant 0 : index
    %0 = vector.load %arg1[%c0, %c0_0] : memref<104x16xf32, #tpu.memory_space<vmem>>, vector<104x16xf32>
    %cst = arith.constant 0.000000e+00 : f32
    %1 = vector.broadcast %cst : f32 to vector<104x128xf32>
    %c0_1 = arith.constant 0 : index
    %c0_2 = arith.constant 0 : index
    %2 = vector.load %arg9[%c0_1, %c0_2] : memref<104x384xf32, #tpu.memory_space<vmem>>, vector<104x128xf32>
    tpu.vector_store %arg9[%c0_1, %c0_2], %1 {strides = array<i32>} : memref<104x384xf32, #tpu.memory_space<vmem>>, vector<104x128xf32>,
    %c0_3 = arith.constant 0 : index
    %c0_4 = arith.constant 0 : index
    %3 = vector.load %arg9[%c0_3, %c0_4] : memref<104x384xf32, #tpu.memory_space<vmem>>, vector<104x16xf32>
    tpu.vector_store %arg9[%c0_3, %c0_4], %0 {strides = array<i32>} : memref<104x384xf32, #tpu.memory_space<vmem>>, vector<104x16xf32>,
    %c0_5 = arith.constant 0 : index
    %c0_6 = arith.constant 0 : index
    %4 = vector.load %arg9[%c0_5, %c0_6] : memref<104x384xf32, #tpu.memory_space<vmem>>, vector<104x128xf32>
    %c0_7 = arith.constant 0 : index
    %c0_8 = arith.constant 0 : index
    %5 = vector.load %arg2[%c0_7, %c0_8] : memref<128x128xf32, #tpu.memory_space<vmem>>, vector<128x128xf32>
    %cst_9 = arith.constant dense<0.000000e+00> : vector<104x128xf32>
    %6 = tpu.matmul %4, %5, %cst_9 {dimension_numbers = #tpu.dot_dimension_numbers<[1], [0], [0], [1], [0, 0, 1, 1], [], []>} : vector<104x128xf32>, vector<128x128xf32>, vector<104x128xf32> -> vector<104x128xf32>
    %c0_10 = arith.constant 0 : index
    %c0_11 = arith.constant 0 : index
    %7 = vector.load %arg4[%c0_10, %c0_11] : memref<1x128xf32, #tpu.memory_space<vmem>>, vector<1x128xf32>
    %8 = vector.broadcast %7 : vector<1x128xf32> to vector<104x128xf32>
    %9 = arith.addf %6, %8 : vector<104x128xf32>
    %cst_12 = arith.constant 0.00999999977 : f32
    %10 = vector.broadcast %cst_12 : f32 to vector<104x128xf32>
    %11 = arith.mulf %10, %9 : vector<104x128xf32>
    %12 = arith.maximumf %9, %11 : vector<104x128xf32>
    %c0_13 = arith.constant 0 : index
    %c128 = arith.constant 128 : index
    %13 = vector.load %arg9[%c0_13, %c128] : memref<104x384xf32, #tpu.memory_space<vmem>>, vector<104x128xf32>
    tpu.vector_store %arg9[%c0_13, %c128], %12 {strides = array<i32>} : memref<104x384xf32, #tpu.memory_space<vmem>>, vector<104x128xf32>,
    %c0_14 = arith.constant 0 : index
    %c0_15 = arith.constant 0 : index
    %14 = vector.load %arg3[%c0_14, %c0_15] : memref<128x128xf32, #tpu.memory_space<vmem>>, vector<128x128xf32>
    %cst_16 = arith.constant dense<0.000000e+00> : vector<104x128xf32>
    %15 = tpu.matmul %12, %14, %cst_16 {dimension_numbers = #tpu.dot_dimension_numbers<[1], [0], [0], [1], [0, 0, 1, 1], [], []>} : vector<104x128xf32>, vector<128x128xf32>, vector<104x128xf32> -> vector<104x128xf32>
    %c0_17 = arith.constant 0 : index
    %c0_18 = arith.constant 0 : index
    %16 = vector.load %arg5[%c0_17, %c0_18] : memref<1x128xf32, #tpu.memory_space<vmem>>, vector<1x128xf32>
    %17 = vector.broadcast %16 : vector<1x128xf32> to vector<104x128xf32>
    %18 = arith.addf %15, %17 : vector<104x128xf32>
    %cst_19 = arith.constant 0.00999999977 : f32
    %19 = vector.broadcast %cst_19 : f32 to vector<104x128xf32>
    %20 = arith.mulf %19, %18 : vector<104x128xf32>
    %21 = arith.maximumf %18, %20 : vector<104x128xf32>
    %c0_20 = arith.constant 0 : index
    %c256 = arith.constant 256 : index
    %22 = vector.load %arg9[%c0_20, %c256] : memref<104x384xf32, #tpu.memory_space<vmem>>, vector<104x128xf32>
    tpu.vector_store %arg9[%c0_20, %c256], %21 {strides = array<i32>} : memref<104x384xf32, #tpu.memory_space<vmem>>, vector<104x128xf32>,
    %c0_21 = arith.constant 0 : index
    %c0_22 = arith.constant 0 : index
    %23 = vector.load %arg9[%c0_21, %c0_22] : memref<104x384xf32, #tpu.memory_space<vmem>>, vector<104x384xf32>
    %c0_23 = arith.constant 0 : index
    %c0_24 = arith.constant 0 : index
    %24 = vector.load %arg6[%c0_23, %c0_24] : memref<384x128xf32, #tpu.memory_space<vmem>>, vector<384x128xf32>
    %cst_25 = arith.constant dense<0.000000e+00> : vector<104x128xf32>
    %25 = tpu.matmul %23, %24, %cst_25 {dimension_numbers = #tpu.dot_dimension_numbers<[1], [0], [0], [1], [0, 0, 1, 1], [], []>} : vector<104x384xf32>, vector<384x128xf32>, vector<104x128xf32> -> vector<104x128xf32>
    %c0_26 = arith.constant 0 : index
    %c0_27 = arith.constant 0 : index
    %26 = vector.load %arg7[%c0_26, %c0_27] : memref<1x128xf32, #tpu.memory_space<vmem>>, vector<1x128xf32>
    %27 = vector.broadcast %26 : vector<1x128xf32> to vector<104x128xf32>
    %28 = arith.addf %25, %27 : vector<104x128xf32>
    %29 = vector.extract_strided_slice %28 {offsets = [0, 0], sizes = [104, 8], strides = [1, 1]} : vector<104x128xf32> to vector<104x8xf32>
    %c0_28 = arith.constant 0 : index
    %c0_29 = arith.constant 0 : index
    %30 = vector.load %arg8[%c0_28, %c0_29] : memref<104x8xf32, #tpu.memory_space<vmem>>, vector<104x8xf32>
    tpu.vector_store %arg8[%c0_28, %c0_29], %29 {strides = array<i32>} : memref<104x8xf32, #tpu.memory_space<vmem>>, vector<104x8xf32>,
    return
  }
  func.func @transform_0(%arg0: i32) -> (i32, i32) {
    %c0_i32 = arith.constant 0 : i32
    %c0_i32_0 = arith.constant 0 : i32
    return %arg0, %c0_i32 : i32, i32
  }
  func.func @transform_1(%arg0: i32) -> (i32, i32) {
    %c0_i32 = arith.constant 0 : i32
    %c0_i32_0 = arith.constant 0 : i32
    %c0_i32_1 = arith.constant 0 : i32
    return %c0_i32, %c0_i32_0 : i32, i32
  }
  func.func @transform_2(%arg0: i32) -> (i32, i32) {
    %c0_i32 = arith.constant 0 : i32
    %c0_i32_0 = arith.constant 0 : i32
    %c0_i32_1 = arith.constant 0 : i32
    return %c0_i32, %c0_i32_0 : i32, i32
  }
  func.func @transform_3(%arg0: i32) -> (i32, i32) {
    %c0_i32 = arith.constant 0 : i32
    %c0_i32_0 = arith.constant 0 : i32
    %c0_i32_1 = arith.constant 0 : i32
    return %c0_i32, %c0_i32_0 : i32, i32
  }
  func.func @transform_4(%arg0: i32) -> (i32, i32) {
    %c0_i32 = arith.constant 0 : i32
    %c0_i32_0 = arith.constant 0 : i32
    %c0_i32_1 = arith.constant 0 : i32
    return %c0_i32, %c0_i32_0 : i32, i32
  }
  func.func @transform_5(%arg0: i32) -> (i32, i32) {
    %c0_i32 = arith.constant 0 : i32
    %c0_i32_0 = arith.constant 0 : i32
    %c0_i32_1 = arith.constant 0 : i32
    return %c0_i32, %c0_i32_0 : i32, i32
  }
  func.func @transform_6(%arg0: i32) -> (i32, i32) {
    %c0_i32 = arith.constant 0 : i32
    %c0_i32_0 = arith.constant 0 : i32
    %c0_i32_1 = arith.constant 0 : i32
    return %c0_i32, %c0_i32_0 : i32, i32
  }
  func.func @transform_7(%arg0: i32) -> (i32, i32) {
    %c0_i32 = arith.constant 0 : i32
    %c0_i32_0 = arith.constant 0 : i32
    return %arg0, %c0_i32 : i32, i32
  }
}

</mosaic_0001>

<bundles_post_ra>
// kernel: tpu_custom_call.1
= control target key start
LH: loop header
LB: loop body
LE: loop exit
PB: predicated region body
PF: predicated region fallthrough
CT: control target
= control target key end

     0   :  { %12 = vsyncpa [#allocation4], 0  ;;  %s2777_s0 = inlined_call_operand.vmem [shape: f32[200,16], index: 0, kind: input, shape index: {}]   ;;  %s2778_s1 = inlined_call_operand.vmem [shape: f32[128,128], index: 1, kind: input, shape index: {}]   ;;  %s2779_s2 = inlined_call_operand.hbm [shape: f32[128,128], index: 2, kind: input, shape index: {}]   ;;  %s2780_s3 = inlined_call_operand.vmem [shape: f32[1,128], index: 3, kind: input, shape index: {}]   ;;  %s2781_s4 = inlined_call_operand.vmem [shape: f32[1,128], index: 4, kind: input, shape index: {}]   ;;  %s2782_s5 = inlined_call_operand.hbm [shape: f32[384,128], index: 5, kind: input, shape index: {}]   ;;  %s2783_s6 = inlined_call_operand.vmem [shape: f32[1,128], index: 6, kind: input, shape index: {}]   ;;  %s2784_s7 = inlined_call_operand.vmem [shape: f32[200,8], index: 7, kind: output, shape index: {}]  }
   0x1   :  { %13 = vsyncpa [#allocation6], 0  ;;  %s2241_s24 = smov 0   ;;  %s2243_s25 = smov 0  }
   0x2   :  { %s2245_s26 = smov 0  }
   0x3 LB: > { %s2254_s27 = sadd.s32 4294967295, %s2160_s26   ;;  %s2256_s28 = sadd.s32 1, %s2160_s26   ;;  %s2160_s26 = sphi %s2245_s26, %s2801_s26   ;;  %s2156_s25 = sphi %s2243_s25, %s2800_s25   ;;  %s2152_s24 = sphi %s2241_s24, %s2799_s24  }
   0x4   : > { %s175_s29 = ssub.s32 %s2160_s26, %s2256_s28  ;;  %s178_s30 = sadd.s32 1, %s2156_s25 }
   0x5   : > { %p176_p0 = scmp.eq.s32.totalorder %s175_s29, 0  ;;  %p188_p1 = scmp.ne.s32.totalorder %s2156_s25, %s2152_s24 }
   0x6   : > { %p189_p2 = scmp.eq.s32.totalorder %s2254_s27, 1  ;;  %p1423_p3 = scmp.ge.s32.totalorder %s2160_s26, 1 }
   0x7   : > { %s2264_s8 = scalar_select %p176_p0, %s2156_s25, %s178_s30  }
   0x8   : > { %p2266_p4 = por %p189_p2, %p188_p1  ;;  %p202_p5 = scmp.lt.s32.totalorder %s2160_s26, 3 }
   0x9   : > { %p2785_p6 = scmp.eq.s32.totalorder %s2254_s27, 0  ;;  %s2194_s11 = smov [#allocation3]  }
   0xa   : > { %s2787_s9 = scalar_select %p2266_p4, 1, 0 }
   0xb   : > { %p2271_p7 = pnand %p1423_p3, %p202_p5  ;;  %s217_s12 = sshll.u32 %s2194_s11, 4  ;;  %s218_s12 = int_to_ptr.vmem [resolvable:$true] %s217_s12 }
   0xc   : > { %s2195_s14 = smov [#allocation5]   ;;  %s2042_s18 = scalar_lea.hbm %s2779_s2, 2048 }
   0xd   : > { %s2788_s10 = scalar_select %p2271_p7, 1, 0 }
   0xe   : > { %p1931_p8 = pneg %p2271_p7  ;;  %s236_s15 = sshll.u32 %s2195_s14, 4  ;;  %s2283_s15 = int_to_ptr.vmem [resolvable:$true] %s236_s15 }
   0xf   : > { %p2043_p10 = scmp.ne.s32.totalorder %s2779_s2, %s2042_s18  ;;  %p2049_p0 = scmp.lt.u32.totalorder %s2042_s18, %s2779_s2 }
  0x10   : > { %p2279_p9 = pnand %p2785_p6, %p1931_p8 }
  0x12   : > { %p2044_p11 = pneg %p2279_p9 }
  0x14   : > { %p2045_p12 = pnand %p2044_p11, %p2043_p10 }
  0x16   : > { %p2046_p13 = pneg %p2045_p12 }
  0x18   : > { %p2051_p1 = pnand %p2049_p0, %p2046_p13 }
  0x1a   : > { %2054 = shalt.err (!%p2051_p1)
}
  0x1b   : > { %s2055_s23 = scalar_lea.vmem %s218_s12, 2048  ;;  %p2063_p8 = scmp.lt.s32.totalorder %s218_s12, %s218_s12 }
  0x1c   : > { %p2056_p2 = scmp.ne.s32.totalorder %s218_s12, %s2055_s23  ;;  %p2064_p6 = scmp.lt.s32.totalorder %s2055_s23, %s2055_s23 }
  0x1e   : > { %p2058_p3 = pnand %p2056_p2, %p2044_p11  ;;  %p2065_p4 = por %p2064_p6, %p2063_p8 }
  0x20   : > { %p2059_p5 = pneg %p2058_p3 }
  0x22   : > { %p2066_p7 = pnand %p2065_p4, %p2059_p5 }
  0x24   : > { %2069 = shalt.err (!%p2066_p7)
}
  0x25   : > { %s2196_s26 = smov 128   ;;  %s2197_s29 = smov 8  }
  0x26   : > { %1934 = dma.hbm_to_vmem [thread:$0]  (!%p2279_p9), %s2779_s2, 2048, %s218_s12, [#allocation4], %s2196_s26, %s2196_s26, %s2197_s29  }
  0x27   : > { %s2070_s17 = scalar_lea.hbm %s2782_s5, 6144 }
  0x28   : > { %p2071_p10 = scmp.ne.s32.totalorder %s2782_s5, %s2070_s17  ;;  %p2077_p7 = scmp.lt.u32.totalorder %s2070_s17, %s2782_s5 }
  0x2a   : > { %p2073_p4 = pnand %p2071_p10, %p2044_p11 }
  0x2c   : > { %p2074_p6 = pneg %p2073_p4 }
  0x2e   : > { %p2079_p12 = pnand %p2077_p7, %p2074_p6 }
  0x30   : > { %2082 = shalt.err (!%p2079_p12)
}
  0x31   : > { %s2083_s12 = scalar_lea.vmem %s2283_s15, 6144  ;;  %p2091_p2 = scmp.lt.s32.totalorder %s2283_s15, %s2283_s15 }
  0x32   : > { %p2084_p13 = scmp.ne.s32.totalorder %s2283_s15, %s2083_s12  ;;  %p2092_p3 = scmp.lt.s32.totalorder %s2083_s12, %s2083_s12 }
  0x34   : > { %p2086_p0 = pnand %p2084_p13, %p2044_p11  ;;  %p2093_p5 = por %p2092_p3, %p2091_p2 }
  0x36   : > { %p2087_p1 = pneg %p2086_p0 }
  0x38   : > { %p2094_p8 = pnand %p2093_p5, %p2087_p1 }
  0x3a   : > { %2097 = shalt.err (!%p2094_p8)
}
  0x3b   : > { %1937 = dma.hbm_to_vmem [thread:$0]  (!%p2279_p9), %s2782_s5, 6144, %s2283_s15, [#allocation6], %s2196_s26, %s2196_s26, %s2197_s29  }
  0x3c   : > { %p2790_p10 = scmp.ne.s32.totalorder %s2788_s10, 0 }
  0x3d   : > { %p2791_p4 = scmp.eq.s32.totalorder (!%p2790_p10), %s2254_s27, 0 }
  0x3e   : > { %272 = sbr.rel (%p2790_p10) target bundleno = 867 (0x363), region = 48 }
  0x45   : > { %2143 = dma.done.wait (%p2791_p4), [#allocation4], 2048   ;;  %p2792_p11 = pmov %p2791_p4 }
  0x46   : > { %p2793_p6 = pmov %p2791_p4 }
  0x47   : > { %2145 = vsyncadd (%p2792_p11), [#allocation4], 4294965248 }
  0x48   : > { %2147 = dma.done.wait (%p2793_p6), [#allocation6], 6144   ;;  %p2794_p7 = pmov %p2791_p4 }
  0x49   : > { %s2343_s13 = smul.u32 13, %s2254_s27  ;;  %v2198_v0 = vmov 0.0|0.0   ;;  %vm2199_vm0 = vmmov 0   ;;  %v2200_v1 = vmov 0.0   ;;  %v383_v2 = vld [vmem:[%s2778_s1] sm:$0xff]  ;;  %v384_v3 = vld [vmem:[%s2778_s1 + $0x8] sm:$0xff] }
  0x4a   : > { %2149 = vsyncadd (%p2794_p7), [#allocation6], 4294961152  ;;  %1818 = vmatprep.subr.bf16.mxu0 %v2198_v0  ;;  %1637 = vmatprep.mubr.msk.f32.mxu0 %vm2199_vm0, %v2200_v1  ;;  %343 = vst [vmem:[#allocation2] sm:$0xff] %v2200_v1  ;;  %v385_v4 = vld [vmem:[%s2778_s1 + $0x10] sm:$0xff]  ;;  %v1819_v5 = vpack.c.bf16 %v384_v3, %v383_v2  ;;  %v386_v6 = vld [vmem:[%s2778_s1 + $0x18] sm:$0xff]  ;;  %vm356_vm1 = vcmask 130048  }
  0x4b   : > { %344 = vst [vmem:[#allocation2 + $0x18] sm:$0xff] %v2200_v1  ;;  %345 = vst [vmem:[#allocation2 + $0x30] sm:$0xff] %v2200_v1  ;;  %p316_p9 = scmp.lt.s32.totalorder %s2343_s13, 24  ;;  %1842 = vmatprep.subr.bf16.mxu1 %v2198_v0  ;;  %1708 = vmatprep.mubr.msk.f32.mxu1 %vm2199_vm0, %v2200_v1  ;;  %v1822_v7 = vpack.c.bf16 %v386_v6, %v385_v4  ;;  %v387_v8 = vld [vmem:[%s2778_s1 + $0x20] sm:$0xff]  ;;  %v388_v9 = vld [vmem:[%s2778_s1 + $0x28] sm:$0xff]  ;;  %s308_s18 = sand.u32 1, %s2152_s24  }
  0x4c   : > { %346 = vst [vmem:[#allocation2 + $0x48] sm:$0xff] %v2200_v1  ;;  %347 = vst [vmem:[#allocation2 + $0x60] sm:$0xff] %v2200_v1  ;;  %1820 = vmatpush3.bf16.msra.mxu0 %v1819_v5  ;;  %v389_v12 = vld [vmem:[%s2778_s1 + $0x30] sm:$0xff]  ;;  %v390_v13 = vld [vmem:[%s2778_s1 + $0x38] sm:$0xff]  ;;  %v1825_v17 = vpack.c.bf16 %v388_v9, %v387_v8  ;;  %vm1121_vm2 = vcmask 64512   ;;  %p2795_p12 = scmp.ne.s32.totalorder %s2787_s9, 0 }
  0x4d   : > { %348 = vst [vmem:[#allocation2 + $0x78] sm:$0xff] %v2200_v1  ;;  %349 = vst [vmem:[#allocation2 + $0x90] sm:$0xff] %v2200_v1  ;;  %s317_s10 = scalar_select %p316_p9, %s2343_s13, 24  ;;  %1821 = vmatprep.subr.bf16.mxu0 %v2198_v0  ;;  %v575_v26 = vld [vmem:[#allocation3] sm:$0xff]  ;;  %v576_v27 = vld [vmem:[#allocation3 + $0x8] sm:$0xff]  ;;  %v1828_v30 = vpack.c.bf16 %v390_v13, %v389_v12 }
  0x4e   : > { %350 = vst [vmem:[#allocation2 + $0xa8] sm:$0xff] %v2200_v1  ;;  %351 = vst [vmem:[#allocation2 + $0xc0] sm:$0xff] %v2200_v1  ;;  %v577_v28 = vld [vmem:[#allocation3 + $0x10] sm:$0xff]  ;;  %v578_v29 = vld [vmem:[#allocation3 + $0x18] sm:$0xff]  ;;  %v1843_v31 = vpack.c.bf16 %v576_v27, %v575_v26  ;;  %s1143_s24 = ssub.s32 (%p2795_p12), 25, %s2343_s13  ;;  %s1446_s22 = smul.u32 (%p2795_p12), 104, %s2254_s27 }
  0x4f   : > { %352 = vst [vmem:[#allocation2 + $0xd8] sm:$0xff] %v2200_v1  ;;  %353 = vst [vmem:[#allocation2 + $0xf0] sm:$0xff] %v2200_v1  ;;  %s1430_s15 = sshll.u32 %s317_s10, 3  ;;  %v391_v32 = vld [vmem:[%s2778_s1 + $0x40] sm:$0xff]  ;;  %v392_v33 = vld [vmem:[%s2778_s1 + $0x48] sm:$0xff]  ;;  %v1846_v34 = vpack.c.bf16 %v578_v29, %v577_v28  ;;  %p1144_p13 = scmp.lt.s32.totalorder (%p2795_p12), %s1143_s24, 13 }
  0x50   : > { %354 = vst [vmem:[#allocation2 + $0x108] sm:$0xff] %v2200_v1  ;;  %355 = vst [vmem:[#allocation2 + $0x120] sm:$0xff] %v2200_v1  ;;  %s2381_s21 = scalar_lea.vmem %s2777_s0, %s1430_s15  ;;  %1823 = vmatpush3.bf16.msra.mxu0 %v1822_v7  ;;  %1844 = vmatpush3.bf16.msra.mxu1 %v1843_v31  ;;  %v579_v35 = vld [vmem:[#allocation3 + $0x20] sm:$0xff]  ;;  %v580_v36 = vld [vmem:[#allocation3 + $0x28] sm:$0xff]  ;;  %v1831_v37 = vpack.c.bf16 %v392_v33, %v391_v32  ;;  %s2695_s15 = scalar_lea.vmem (%p2795_p12), %s2784_s7, %s1446_s22  }
  0x51   : > { %v330_v10 = vld [vmem:[%s2381_s21] sm:$0xff]  ;;  %v331_v11 = vld [vmem:[%s2381_s21 + $0x8] sm:$0xff]  ;;  %v332_v14 = vld [vmem:[%s2381_s21 + $0x10] sm:$0xff]  ;;  %1824 = vmatprep.subr.bf16.mxu0 %v2198_v0  ;;  %1845 = vmatprep.subr.bf16.mxu1 %v2198_v0  ;;  %v1849_v40 = vpack.c.bf16 %v580_v36, %v579_v35 }
  0x52   : > { %357 = vst.msk [vmem:[#allocation2] sm:$0xff] %vm356_vm1, %v330_v10  ;;  %358 = vst.msk [vmem:[#allocation2 + $0x18] sm:$0xff] %vm356_vm1, %v331_v11  ;;  %v333_v15 = vld [vmem:[%s2381_s21 + $0x18] sm:$0xff]  ;;  %v334_v16 = vld [vmem:[%s2381_s21 + $0x20] sm:$0xff] }
  0x53   : > { %359 = vst.msk [vmem:[#allocation2 + $0x30] sm:$0xff] %vm356_vm1, %v332_v14  ;;  %360 = vst.msk [vmem:[#allocation2 + $0x48] sm:$0xff] %vm356_vm1, %v333_v15  ;;  %v335_v18 = vld [vmem:[%s2381_s21 + $0x28] sm:$0xff]  ;;  %v336_v19 = vld [vmem:[%s2381_s21 + $0x30] sm:$0xff] }
  0x54   : > { %361 = vst.msk [vmem:[#allocation2 + $0x60] sm:$0xff] %vm356_vm1, %v334_v16  ;;  %v337_v20 = vld [vmem:[%s2381_s21 + $0x38] sm:$0xff]  ;;  %362 = vst.msk [vmem:[#allocation2 + $0x78] sm:$0xff] %vm356_vm1, %v335_v18  ;;  %v338_v21 = vld [vmem:[%s2381_s21 + $0x40] sm:$0xff]  ;;  %1826 = vmatpush3.bf16.msra.mxu0 %v1825_v17  ;;  %1847 = vmatpush3.bf16.msra.mxu1 %v1846_v34 }
  0x55   : > { %363 = vst.msk [vmem:[#allocation2 + $0x90] sm:$0xff] %vm356_vm1, %v336_v19  ;;  %364 = vst.msk [vmem:[#allocation2 + $0xa8] sm:$0xff] %vm356_vm1, %v337_v20  ;;  %v339_v22 = vld [vmem:[%s2381_s21 + $0x48] sm:$0xff]  ;;  %v340_v23 = vld [vmem:[%s2381_s21 + $0x50] sm:$0xff]  ;;  %1827 = vmatprep.subr.bf16.mxu0 %v2198_v0  ;;  %1848 = vmatprep.subr.bf16.mxu1 %v2198_v0 }
  0x56   : > { %365 = vst.msk [vmem:[#allocation2 + $0xc0] sm:$0xff] %vm356_vm1, %v338_v21  ;;  %366 = vst.msk [vmem:[#allocation2 + $0xd8] sm:$0xff] %vm356_vm1, %v339_v22  ;;  %v341_v24 = vld [vmem:[%s2381_s21 + $0x58] sm:$0xff]  ;;  %v342_v25 = vld [vmem:[%s2381_s21 + $0x60] sm:$0xff]  ;;  %s1922_s21 = smul.u32 104, %s308_s18 }
  0x57   : > { %367 = vst.msk [vmem:[#allocation2 + $0xf0] sm:$0xff] %vm356_vm1, %v340_v23  ;;  %368 = vst.msk [vmem:[#allocation2 + $0x108] sm:$0xff] %vm356_vm1, %v341_v24  ;;  %v393_v38 = vld [vmem:[%s2778_s1 + $0x50] sm:$0xff]  ;;  %v394_v39 = vld [vmem:[%s2778_s1 + $0x58] sm:$0xff] }
  0x58   : > { %369 = vst.msk [vmem:[#allocation2 + $0x120] sm:$0xff] %vm356_vm1, %v342_v25  ;;  %1829 = vmatpush3.bf16.msra.mxu0 %v1828_v30  ;;  %v581_v41 = vld [vmem:[#allocation3 + $0x30] sm:$0xff]  ;;  %v582_v42 = vld [vmem:[#allocation3 + $0x38] sm:$0xff]  ;;  %v1834_v43 = vpack.c.bf16 %v394_v39, %v393_v38  ;;  %v395_v44 = vld [vmem:[%s2778_s1 + $0x60] sm:$0xff]  ;;  %1850 = vmatpush3.bf16.msra.mxu1 %v1849_v40  ;;  %s2647_s12 = scalar_lea.vmem [#allocation7], %s1922_s21  }
  0x59   : > { %1830 = vmatprep.subr.bf16.mxu0 %v2198_v0  ;;  %v396_v45 = vld [vmem:[%s2778_s1 + $0x68] sm:$0xff]  ;;  %v1852_v46 = vpack.c.bf16 %v582_v42, %v581_v41  ;;  %1851 = vmatprep.subr.bf16.mxu1 %v2198_v0  ;;  %v583_v47 = vld [vmem:[#allocation3 + $0x40] sm:$0xff]  ;;  %v584_v48 = vld [vmem:[#allocation3 + $0x48] sm:$0xff] }
  0x5a   : > { %v1837_v49 = vpack.c.bf16 %v396_v45, %v395_v44  ;;  %v397_v50 = vld [vmem:[%s2778_s1 + $0x70] sm:$0xff]  ;;  %v398_v51 = vld [vmem:[%s2778_s1 + $0x78] sm:$0xff]  ;;  %v823_v53 = vld [vmem:[#allocation5 + $0x88] sm:$0xff]  ;;  %v1855_v54 = vpack.c.bf16 %v584_v48, %v583_v47 }
  0x5b   : > { %v822_v52 = vld [vmem:[#allocation5 + $0x80] sm:$0xff]  ;;  %v585_v55 = vld [vmem:[#allocation3 + $0x50] sm:$0xff]  ;;  %v586_v56 = vld [vmem:[#allocation3 + $0x58] sm:$0xff]  ;;  %v1840_v57 = vpack.c.bf16 %v398_v51, %v397_v50 }
  0x5c   : > { %1832 = vmatpush3.bf16.msra.mxu0 %v1831_v37  ;;  %1853 = vmatpush3.bf16.msra.mxu1 %v1852_v46  ;;  %v1866_v58 = vpack.c.bf16 %v823_v53, %v822_v52  ;;  %v806_v59 = vld [vmem:[#allocation5] sm:$0xff]  ;;  %v807_v60 = vld [vmem:[#allocation5 + $0x8] sm:$0xff]  ;;  %v824_v61 = vld [vmem:[#allocation5 + $0x90] sm:$0xff]  ;;  %v1858_v63 = vpack.c.bf16 %v586_v56, %v585_v55 }
  0x5d   : > { %1833 = vmatprep.subr.bf16.mxu0 %v2198_v0  ;;  %1854 = vmatprep.subr.bf16.mxu1 %v2198_v0  ;;  %v825_v62 = vld [vmem:[#allocation5 + $0x98] sm:$0xff]  ;;  %v2457_v2 = vld [vmem:[#allocation2] sm:$0xff]  ;;  %v1868_v3 = vpack.c.bf16 %v807_v60, %v806_v59  ;;  %v808_v5 = vld [vmem:[#allocation5 + $0x10] sm:$0xff] }
  0x5e   : > { %v1870_v4 = vpack.c.bf16 %v825_v62, %v824_v61  ;;  %v809_v6 = vld [vmem:[#allocation5 + $0x18] sm:$0xff]  ;;  %v826_v7 = vld [vmem:[#allocation5 + $0xa0] sm:$0xff]  ;;  %v827_v8 = vld [vmem:[#allocation5 + $0xa8] sm:$0xff] }
  0x5f   : > { %v2463_v9 = vld [vmem:[#allocation2 + $0x18] sm:$0xff]  ;;  %v1872_v10 = vpack.c.bf16 %v809_v6, %v808_v5  ;;  %v1874_v11 = vpack.c.bf16 %v827_v8, %v826_v7  ;;  %v811_v13 = vld [vmem:[#allocation5 + $0x28] sm:$0xff]  ;;  %v828_v14 = vld [vmem:[#allocation5 + $0xb0] sm:$0xff] }
  0x60   : > { %1835 = vmatpush3.bf16.msra.mxu0 %v1834_v43  ;;  %1856 = vmatpush3.bf16.msra.mxu1 %v1855_v54  ;;  %v810_v12 = vld [vmem:[#allocation5 + $0x20] sm:$0xff]  ;;  %v829_v15 = vld [vmem:[#allocation5 + $0xb8] sm:$0xff]  ;;  %v812_v19 = vld [vmem:[#allocation5 + $0x30] sm:$0xff] }
  0x61   : > { %1836 = vmatprep.subr.bf16.mxu0 %v2198_v0  ;;  %1857 = vmatprep.subr.bf16.mxu1 %v2198_v0  ;;  %v2468_v16 = vld [vmem:[#allocation2 + $0x30] sm:$0xff]  ;;  %v1876_v17 = vpack.c.bf16 %v811_v13, %v810_v12  ;;  %v1878_v18 = vpack.c.bf16 %v829_v15, %v828_v14  ;;  %v2473_v21 = vld [vmem:[#allocation2 + $0x48] sm:$0xff]  ;;  %v2478_v23 = vld [vmem:[#allocation2 + $0x60] sm:$0xff] }
  0x62   : > { %v813_v20 = vld [vmem:[#allocation5 + $0x38] sm:$0xff]  ;;  %v2483_v24 = vld [vmem:[#allocation2 + $0x78] sm:$0xff]  ;;  %v2493_v26 = vld [vmem:[#allocation2 + $0xa8] sm:$0xff] }
  0x63   : > { %v1880_v22 = vpack.c.bf16 %v813_v20, %v812_v19  ;;  %v2488_v25 = vld [vmem:[#allocation2 + $0x90] sm:$0xff]  ;;  %v2498_v27 = vld [vmem:[#allocation2 + $0xc0] sm:$0xff]  ;;  %v2503_v28 = vld [vmem:[#allocation2 + $0xd8] sm:$0xff] }
  0x64   : > { %1838 = vmatpush3.bf16.msra.mxu0 %v1837_v49  ;;  %1859 = vmatpush3.bf16.msra.mxu1 %v1858_v63  ;;  %v2508_v29 = vld [vmem:[#allocation2 + $0xf0] sm:$0xff]  ;;  %v2513_v30 = vld [vmem:[#allocation2 + $0x108] sm:$0xff]  ;;  %v2518_v31 = vld [vmem:[#allocation2 + $0x120] sm:$0xff] }
  0x65   : > { %1839 = vmatprep.subr.bf16.mxu0 %v2198_v0  ;;  %1860 = vmatprep.subr.bf16.mxu1 %v2198_v0  ;;  %v830_v32 = vld [vmem:[#allocation5 + $0xc0] sm:$0xff]  ;;  %v831_v33 = vld [vmem:[#allocation5 + $0xc8] sm:$0xff]  ;;  %v832_v38 = vld [vmem:[#allocation5 + $0xd0] sm:$0xff] }
  0x66   : > { %v1882_v34 = vpack.c.bf16 %v831_v33, %v830_v32  ;;  %v814_v35 = vld [vmem:[#allocation5 + $0x40] sm:$0xff]  ;;  %v815_v36 = vld [vmem:[#allocation5 + $0x48] sm:$0xff]  ;;  %v833_v39 = vld [vmem:[#allocation5 + $0xd8] sm:$0xff] }
  0x67   : > { %v1884_v37 = vpack.c.bf16 %v815_v36, %v814_v35  ;;  %v1886_v40 = vpack.c.bf16 %v833_v39, %v832_v38  ;;  %v816_v41 = vld [vmem:[#allocation5 + $0x50] sm:$0xff]  ;;  %v817_v42 = vld [vmem:[#allocation5 + $0x58] sm:$0xff]  ;;  %v587_v43 = vld [vmem:[#allocation3 + $0x60] sm:$0xff] }
  0x68   : > { %1841 = vmatpush3.bf16.msra.mxu0 %v1840_v57  ;;  %v588_v44 = vld [vmem:[#allocation3 + $0x68] sm:$0xff]  ;;  %v1888_v45 = vpack.c.bf16 %v817_v42, %v816_v41  ;;  %v834_v47 = vld [vmem:[#allocation5 + $0xe0] sm:$0xff]  ;;  %v589_v52 = vld [vmem:[#allocation3 + $0x70] sm:$0xff] }
  0x69   : > { %1867 = vmatprep.subr.bf16.mxu0 %v1866_v58  ;;  %v1861_v46 = vpack.c.bf16 %v588_v44, %v587_v43  ;;  %v835_v48 = vld [vmem:[#allocation5 + $0xe8] sm:$0xff]  ;;  %v818_v50 = vld [vmem:[#allocation5 + $0x60] sm:$0xff]  ;;  %v590_v53 = vld [vmem:[#allocation3 + $0x78] sm:$0xff] }
  0x6a   : > { %v1890_v49 = vpack.c.bf16 %v835_v48, %v834_v47  ;;  %v819_v51 = vld [vmem:[#allocation5 + $0x68] sm:$0xff]  ;;  %v1864_v55 = vpack.c.bf16 %v590_v53, %v589_v52  ;;  %v836_v56 = vld [vmem:[#allocation5 + $0xf0] sm:$0xff]  ;;  %v837_v57 = vld [vmem:[#allocation5 + $0xf8] sm:$0xff] }
  0x6b   : > { %1638 = vmatmul.mubr.f32.vlgmr.msra.gmra.mrb[0].mxu0 %v2457_v2  ;;  %1862 = vmatpush3.bf16.msra.mxu1 %v1861_v46  ;;  %v1892_v54 = vpack.c.bf16 %v819_v51, %v818_v50  ;;  %v1894_v58 = vpack.c.bf16 %v837_v57, %v836_v56  ;;  %v820_v59 = vld [vmem:[#allocation5 + $0x70] sm:$0xff]  ;;  %v821_v60 = vld [vmem:[#allocation5 + $0x78] sm:$0xff]  ;;  %v2526_v62 = vld [vmem:[%s2780_s3] ss:$0 sm:$0xff] }
  0x6c   : > { %1640 = vmatprep.mubr.msk.f32.mxu0 %vm2199_vm0, %v2200_v1  ;;  %1869 = vmatpush3.bf16.msra.mxu0 %v1868_v3  ;;  %v1896_v61 = vpack.c.bf16 %v821_v60, %v820_v59  ;;  %v838_v5 = vld [vmem:[#allocation5 + $0x100] sm:$0xff]  ;;  %v839_v6 = vld [vmem:[#allocation5 + $0x108] sm:$0xff]  ;;  %v840_v14 = vld [vmem:[#allocation5 + $0x110] sm:$0xff] }
  0x6d   : > { %1871 = vmatprep.subr.bf16.mxu0 %v1870_v4  ;;  %1863 = vmatprep.subr.bf16.mxu1 %v2198_v0  ;;  %v1899_v13 = vpack.c.bf16 %v839_v6, %v838_v5  ;;  %v841_v15 = vld [vmem:[#allocation5 + $0x118] sm:$0xff]  ;;  %v842_v33 = vld [vmem:[#allocation5 + $0x120] sm:$0xff]  ;;  %v847_v48 = vld [vmem:[#allocation5 + $0x148] sm:$0xff] }
  0x6e   : > { %v1902_v32 = vpack.c.bf16 %v841_v15, %v840_v14  ;;  %v845_v41 = vld [vmem:[#allocation5 + $0x138] sm:$0xff]  ;;  %v846_v47 = vld [vmem:[#allocation5 + $0x140] sm:$0xff] }
  0x6f   : > { %1641 = vmatmul.mubr.f32.gmra.mrb[2].mxu0 %v2463_v9  ;;  %1865 = vmatpush3.bf16.msra.mxu1 %v1864_v55  ;;  %v1911_v53 = vpack.c.bf16 %v847_v48, %v846_v47  ;;  %v849_v55 = vld [vmem:[#allocation5 + $0x158] sm:$0xff] }
  0x70   : > { %1643 = vmatprep.mubr.msk.f32.mxu0 %vm2199_vm0, %v2200_v1  ;;  %1873 = vmatpush3.bf16.msra.mxu0 %v1872_v10 }
  0x71   : > { %1875 = vmatprep.subr.bf16.mxu0 %v1874_v11  ;;  %1898 = vmatprep.subr.bf16.mxu1 %v2198_v0 }
  0x73   : > { %1644 = vmatmul.mubr.f32.gmra.mrb[4].mxu0 %v2468_v16 }
  0x74   : > { %1646 = vmatprep.mubr.msk.f32.mxu0 %vm2199_vm0, %v2200_v1  ;;  %1877 = vmatpush3.bf16.msra.mxu0 %v1876_v17 }
  0x75   : > { %1879 = vmatprep.subr.bf16.mxu0 %v1878_v18 }
  0x77   : > { %1647 = vmatmul.mubr.f32.gmra.mrb[6].mxu0 %v2473_v21 }
  0x78   : > { %1649 = vmatprep.mubr.msk.f32.mxu0 %vm2199_vm0, %v2200_v1  ;;  %1881 = vmatpush3.bf16.msra.mxu0 %v1880_v22 }
  0x79   : > { %1883 = vmatprep.subr.bf16.mxu0 %v1882_v34  ;;  %v843_v34 = vld [vmem:[#allocation5 + $0x128] sm:$0xff] }
  0x7a   : > { %v1905_v39 = vpack.c.bf16 %v843_v34, %v842_v33 }
  0x7b   : > { %1650 = vmatmul.mubr.f32.gmra.mrb[8].mxu0 %v2478_v23 }
  0x7c   : > { %1652 = vmatprep.mubr.msk.f32.mxu0 %vm2199_vm0, %v2200_v1  ;;  %1885 = vmatpush3.bf16.msra.mxu0 %v1884_v37 }
  0x7d   : > { %1887 = vmatprep.subr.bf16.mxu0 %v1886_v40  ;;  %v844_v40 = vld [vmem:[#allocation5 + $0x130] sm:$0xff] }
  0x7e   : > { %v1908_v46 = vpack.c.bf16 %v845_v41, %v844_v40  ;;  %v853_v40 = vld [vmem:[#allocation5 + $0x178] sm:$0xff] }
  0x7f   : > { %1653 = vmatmul.mubr.f32.gmra.mrb[10].mxu0 %v2483_v24 }
  0x80   : > { %1655 = vmatprep.mubr.msk.f32.mxu0 %vm2199_vm0, %v2200_v1  ;;  %1889 = vmatpush3.bf16.msra.mxu0 %v1888_v45 }
  0x81   : > { %1891 = vmatprep.subr.bf16.mxu0 %v1890_v49 }
  0x83   : > { %1656 = vmatmul.mubr.f32.gmra.mrb[12].mxu0 %v2488_v25 }
  0x84   : > { %1658 = vmatprep.mubr.msk.f32.mxu0 %vm2199_vm0, %v2200_v1  ;;  %1893 = vmatpush3.bf16.msra.mxu0 %v1892_v54  ;;  %v848_v54 = vld [vmem:[#allocation5 + $0x150] sm:$0xff] }
  0x85   : > { %1895 = vmatprep.subr.bf16.mxu0 %v1894_v58  ;;  %v1914_v60 = vpack.c.bf16 %v849_v55, %v848_v54 }
  0x87   : > { %1659 = vmatmul.mubr.f32.gmra.mrb[14].mxu0 %v2493_v26 }
  0x88   : > { %1661 = vmatprep.mubr.msk.f32.mxu0 %vm2199_vm0, %v2200_v1  ;;  %1897 = vmatpush3.bf16.msra.mxu0 %v1896_v61 }
  0x8b   : > { %1662 = vmatmul.mubr.f32.gmra.mrb[16].mxu0 %v2498_v27 }
  0x8c   : > { %1664 = vmatprep.mubr.msk.f32.mxu0 %vm2199_vm0, %v2200_v1 }
  0x8f   : > { %1665 = vmatmul.mubr.f32.gmra.mrb[18].mxu0 %v2503_v28 }
  0x90   : > { %1667 = vmatprep.mubr.msk.f32.mxu0 %vm2199_vm0, %v2200_v1 }
  0x93   : > { %1668 = vmatmul.mubr.f32.gmra.mrb[20].mxu0 %v2508_v29 }
  0x94   : > { %1670 = vmatprep.mubr.msk.f32.mxu0 %vm2199_vm0, %v2200_v1 }
  0x97   : > { %1671 = vmatmul.mubr.f32.gmra.mrb[22].mxu0 %v2513_v30 }
  0x98   : > { %1673 = vmatprep.mubr.msk.f32.mxu0 %vm2199_vm0, %v2200_v1 }
  0x9b   : > { %1674 = vmatmul.mubr.f32.gmra.mrb[24].mxu0 %v2518_v31 }
 0x13e   : > { %v472_v63 = vpop.f32.mrb[0].mxu0 }
 0x13f   : > { %v473_v3 = vadd.f32 %v2526_v62, %v472_v63  ;;  %v1639_v4 = vpop.f32.mrb[1].mxu0 }
 0x141   : > { %v536_v7 = vmul.f32 0.01, %v473_v3 }
 0x142   : > { %v477_v8 = vpop.f32.mrb[2].mxu0 }
 0x143   : > { %v549_v10 = vmax.f32 %v473_v3, %v536_v7  ;;  %v478_v11 = vadd.f32 %v2526_v62, %v477_v8  ;;  %v1642_v12 = vpop.f32.mrb[3].mxu0 }
 0x145   : > { %v537_v17 = vmul.f32 0.01, %v478_v11  ;;  %1709 = vmatmul.mubr.f32.vlgmr.msra.gmra.mrb[0].mxu1 %v549_v10  ;;  %925 = vmatprep.mubr.f32.mxu0 %v549_v10 }
 0x146   : > { %v482_v18 = vpop.f32.mrb[4].mxu0  ;;  %1711 = vmatprep.mubr.msk.f32.mxu1 %vm2199_vm0, %v2200_v1  ;;  %926 = vmatmul.mubr.f32.vlgmr.msra.gmra.mrb[26].mxu0 %v2457_v2 }
 0x147   : > { %v550_v19 = vmax.f32 %v478_v11, %v537_v17  ;;  %v483_v20 = vadd.f32 %v2526_v62, %v482_v18  ;;  %v1645_v22 = vpop.f32.mrb[5].mxu0  ;;  %1900 = vmatpush3.bf16.msra.mxu1 %v1899_v13 }
 0x148   : > { %1901 = vmatprep.subr.bf16.mxu1 %v2198_v0 }
 0x149   : > { %v538_v35 = vmul.f32 0.01, %v483_v20  ;;  %1712 = vmatmul.mubr.f32.gmra.mrb[2].mxu1 %v550_v19  ;;  %930 = vmatprep.mubr.f32.mxu0 %v550_v19 }
 0x14a   : > { %v487_v36 = vpop.f32.mrb[6].mxu0  ;;  %1714 = vmatprep.mubr.msk.f32.mxu1 %vm2199_vm0, %v2200_v1  ;;  %931 = vmatmul.mubr.f32.gmra.mrb[28].mxu0 %v2463_v9 }
 0x14b   : > { %v551_v2 = vmax.f32 %v483_v20, %v538_v35  ;;  %v488_v37 = vadd.f32 %v2526_v62, %v487_v36  ;;  %v1648_v38 = vpop.f32.mrb[7].mxu0  ;;  %1903 = vmatpush3.bf16.msra.mxu1 %v1902_v32 }
 0x14c   : > { %1904 = vmatprep.subr.bf16.mxu1 %v2198_v0  ;;  %v851_v38 = vld [vmem:[#allocation5 + $0x168] sm:$0xff] }
 0x14d   : > { %v539_v42 = vmul.f32 0.01, %v488_v37  ;;  %1715 = vmatmul.mubr.f32.gmra.mrb[4].mxu1 %v551_v2  ;;  %935 = vmatprep.mubr.f32.mxu0 %v551_v2 }
 0x14e   : > { %v492_v43 = vpop.f32.mrb[8].mxu0  ;;  %1717 = vmatprep.mubr.msk.f32.mxu1 %vm2199_vm0, %v2200_v1  ;;  %936 = vmatmul.mubr.f32.gmra.mrb[30].mxu0 %v2468_v16 }
 0x14f   : > { %v552_v9 = vmax.f32 %v488_v37, %v539_v42  ;;  %v493_v44 = vadd.f32 %v2526_v62, %v492_v43  ;;  %v1651_v45 = vpop.f32.mrb[9].mxu0  ;;  %1906 = vmatpush3.bf16.msra.mxu1 %v1905_v39  ;;  %v852_v39 = vld [vmem:[#allocation5 + $0x170] sm:$0xff] }
 0x150   : > { %1907 = vmatprep.subr.bf16.mxu1 %v2198_v0  ;;  %v1920_v41 = vpack.c.bf16 %v853_v40, %v852_v39 }
 0x151   : > { %v540_v49 = vmul.f32 0.01, %v493_v44  ;;  %1718 = vmatmul.mubr.f32.gmra.mrb[6].mxu1 %v552_v9  ;;  %940 = vmatprep.mubr.f32.mxu0 %v552_v9 }
 0x152   : > { %v497_v50 = vpop.f32.mrb[10].mxu0  ;;  %1720 = vmatprep.mubr.msk.f32.mxu1 %vm2199_vm0, %v2200_v1  ;;  %941 = vmatmul.mubr.f32.gmra.mrb[32].mxu0 %v2473_v21 }
 0x153   : > { %v553_v16 = vmax.f32 %v493_v44, %v540_v49  ;;  %v498_v51 = vadd.f32 %v2526_v62, %v497_v50  ;;  %v1654_v52 = vpop.f32.mrb[11].mxu0  ;;  %1909 = vmatpush3.bf16.msra.mxu1 %v1908_v46 }
 0x154   : > { %1910 = vmatprep.subr.bf16.mxu1 %v2198_v0 }
 0x155   : > { %v541_v56 = vmul.f32 0.01, %v498_v51  ;;  %1721 = vmatmul.mubr.f32.gmra.mrb[8].mxu1 %v553_v16  ;;  %945 = vmatprep.mubr.f32.mxu0 %v553_v16 }
 0x156   : > { %v502_v57 = vpop.f32.mrb[12].mxu0  ;;  %1723 = vmatprep.mubr.msk.f32.mxu1 %vm2199_vm0, %v2200_v1  ;;  %946 = vmatmul.mubr.f32.gmra.mrb[34].mxu0 %v2478_v23 }
 0x157   : > { %v554_v21 = vmax.f32 %v498_v51, %v541_v56  ;;  %v503_v58 = vadd.f32 %v2526_v62, %v502_v57  ;;  %v1657_v59 = vpop.f32.mrb[13].mxu0  ;;  %1912 = vmatpush3.bf16.msra.mxu1 %v1911_v53 }
 0x158   : > { %1913 = vmatprep.subr.bf16.mxu1 %v2198_v0 }
 0x159   : > { %v542_v61 = vmul.f32 0.01, %v503_v58  ;;  %1724 = vmatmul.mubr.f32.gmra.mrb[10].mxu1 %v554_v21  ;;  %950 = vmatprep.mubr.f32.mxu0 %v554_v21 }
 0x15a   : > { %v507_v63 = vpop.f32.mrb[14].mxu0  ;;  %1726 = vmatprep.mubr.msk.f32.mxu1 %vm2199_vm0, %v2200_v1  ;;  %951 = vmatmul.mubr.f32.gmra.mrb[36].mxu0 %v2483_v24 }
 0x15b   : > { %v555_v3 = vmax.f32 %v503_v58, %v542_v61  ;;  %v508_v23 = vadd.f32 %v2526_v62, %v507_v63  ;;  %v1660_v4 = vpop.f32.mrb[15].mxu0  ;;  %1915 = vmatpush3.bf16.msra.mxu1 %v1914_v60 }
 0x15c   : > { %1916 = vmatprep.subr.bf16.mxu1 %v2198_v0 }
 0x15d   : > { %v543_v5 = vmul.f32 0.01, %v508_v23  ;;  %1727 = vmatmul.mubr.f32.gmra.mrb[12].mxu1 %v555_v3  ;;  %955 = vmatprep.mubr.f32.mxu0 %v555_v3 }
 0x15e   : > { %v512_v6 = vpop.f32.mrb[16].mxu0  ;;  %1729 = vmatprep.mubr.msk.f32.mxu1 %vm2199_vm0, %v2200_v1  ;;  %956 = vmatmul.mubr.f32.gmra.mrb[38].mxu0 %v2488_v25 }
 0x15f   : > { %v556_v7 = vmax.f32 %v508_v23, %v543_v5  ;;  %v513_v8 = vadd.f32 %v2526_v62, %v512_v6  ;;  %v1663_v24 = vpop.f32.mrb[17].mxu0 }
 0x161   : > { %v544_v10 = vmul.f32 0.01, %v513_v8  ;;  %1730 = vmatmul.mubr.f32.gmra.mrb[14].mxu1 %v556_v7  ;;  %960 = vmatprep.mubr.f32.mxu0 %v556_v7 }
 0x162   : > { %v517_v11 = vpop.f32.mrb[18].mxu0  ;;  %1732 = vmatprep.mubr.msk.f32.mxu1 %vm2199_vm0, %v2200_v1  ;;  %961 = vmatmul.mubr.f32.gmra.mrb[40].mxu0 %v2493_v26 }
 0x163   : > { %v557_v12 = vmax.f32 %v513_v8, %v544_v10  ;;  %v518_v13 = vadd.f32 %v2526_v62, %v517_v11  ;;  %v1666_v14 = vpop.f32.mrb[19].mxu0 }
 0x165   : > { %v545_v15 = vmul.f32 0.01, %v518_v13  ;;  %1733 = vmatmul.mubr.f32.gmra.mrb[16].mxu1 %v557_v12  ;;  %965 = vmatprep.mubr.f32.mxu0 %v557_v12 }
 0x166   : > { %v522_v25 = vpop.f32.mrb[20].mxu0  ;;  %1735 = vmatprep.mubr.msk.f32.mxu1 %vm2199_vm0, %v2200_v1  ;;  %966 = vmatmul.mubr.f32.gmra.mrb[42].mxu0 %v2498_v27 }
 0x167   : > { %v558_v17 = vmax.f32 %v518_v13, %v545_v15  ;;  %v523_v18 = vadd.f32 %v2526_v62, %v522_v25  ;;  %v1669_v19 = vpop.f32.mrb[21].mxu0 }
 0x169   : > { %v546_v20 = vmul.f32 0.01, %v523_v18  ;;  %1736 = vmatmul.mubr.f32.gmra.mrb[18].mxu1 %v558_v17  ;;  %970 = vmatprep.mubr.f32.mxu0 %v558_v17 }
 0x16a   : > { %v527_v26 = vpop.f32.mrb[22].mxu0  ;;  %1738 = vmatprep.mubr.msk.f32.mxu1 %vm2199_vm0, %v2200_v1  ;;  %971 = vmatmul.mubr.f32.gmra.mrb[44].mxu0 %v2503_v28 }
 0x16b   : > { %v559_v22 = vmax.f32 %v523_v18, %v546_v20  ;;  %v528_v32 = vadd.f32 %v2526_v62, %v527_v26  ;;  %v1672_v33 = vpop.f32.mrb[23].mxu0 }
 0x16d   : > { %v547_v34 = vmul.f32 0.01, %v528_v32  ;;  %1739 = vmatmul.mubr.f32.gmra.mrb[20].mxu1 %v559_v22  ;;  %975 = vmatprep.mubr.f32.mxu0 %v559_v22 }
 0x16e   : > { %v532_v27 = vpop.f32.mrb[24].mxu0  ;;  %1741 = vmatprep.mubr.msk.f32.mxu1 %vm2199_vm0, %v2200_v1  ;;  %976 = vmatmul.mubr.f32.gmra.mrb[46].mxu0 %v2508_v29  ;;  %v850_v29 = vld [vmem:[#allocation5 + $0x160] sm:$0xff] }
 0x16f   : > { %v560_v35 = vmax.f32 %v528_v32, %v547_v34  ;;  %v533_v36 = vadd.f32 %v2526_v62, %v532_v27  ;;  %v1675_v2 = vpop.f32.mrb[25].mxu0  ;;  %v1917_v62 = vpack.c.bf16 %v851_v38, %v850_v29 }
 0x171   : > { %v548_v37 = vmul.f32 0.01, %v533_v36  ;;  %1742 = vmatmul.mubr.f32.gmra.mrb[22].mxu1 %v560_v35  ;;  %980 = vmatprep.mubr.f32.mxu0 %v560_v35 }
 0x172   : > { %1744 = vmatprep.mubr.msk.f32.mxu1 %vm2199_vm0, %v2200_v1  ;;  %981 = vmatmul.mubr.f32.gmra.mrb[48].mxu0 %v2513_v30  ;;  %v2590_v30 = vld [vmem:[%s2781_s4] ss:$0 sm:$0xff] }
 0x173   : > { %v561_v28 = vmax.f32 %v533_v36, %v548_v37  ;;  %1918 = vmatpush3.bf16.msra.mxu1 %v1917_v62 }
 0x174   : > { %1919 = vmatprep.subr.bf16.mxu1 %v2198_v0 }
 0x175   : > { %1745 = vmatmul.mubr.f32.gmra.mrb[24].mxu1 %v561_v28  ;;  %985 = vmatprep.mubr.f32.mxu0 %v561_v28 }
 0x176   : > { %1779 = vmatprep.mubr.msk.f32.mxu1 %vm2199_vm0, %v2200_v1  ;;  %986 = vmatmul.mubr.f32.gmra.mrb[50].mxu0 %v2518_v31 }
 0x177   : > { %1921 = vmatpush3.bf16.msra.mxu1 %v1920_v41 }
 0x218   : > { %v664_v42 = vpop.f32.mrb[0].mxu1 }
 0x219   : > { %v665_v43 = vadd.f32 %v2590_v30, %v664_v42  ;;  %v1710_v9 = vpop.f32.mrb[1].mxu1  ;;  %v1537_v31 = vpop.f32.mrb[26].mxu0 }
 0x21a   : > { %v1538_v44 = vpop.f32.mrb[27].mxu0 }
 0x21b   : > { %v728_v45 = vmul.f32 0.01, %v665_v43  ;;  %v2593_v46 = vadd.f32 %v1538_v44, %v1537_v31 }
 0x21c   : > { %v669_v47 = vpop.f32.mrb[2].mxu1 }
 0x21d   : > { %v741_v0 = vmax.f32 %v665_v43, %v728_v45  ;;  %v670_v48 = vadd.f32 %v2590_v30, %v669_v47  ;;  %v1713_v49 = vpop.f32.mrb[3].mxu1  ;;  %v1540_v50 = vpop.f32.mrb[28].mxu0 }
 0x21e   : > { %v1541_v16 = vpop.f32.mrb[29].mxu0 }
 0x21f   : > { %v729_v51 = vmul.f32 0.01, %v670_v48  ;;  %1780 = vmatmul.mubr.f32.vlgmr.msra.gmra.mrb[26].mxu1 %v741_v0  ;;  %v2596_v52 = vadd.f32 %v1541_v16, %v1540_v50 }
 0x220   : > { %v674_v53 = vpop.f32.mrb[4].mxu1  ;;  %1782 = vmatprep.mubr.msk.f32.mxu1 %vm2199_vm0, %v2200_v1 }
 0x221   : > { %v742_v54 = vmax.f32 %v670_v48, %v729_v51  ;;  %v675_v55 = vadd.f32 %v2590_v30, %v674_v53  ;;  %v1716_v56 = vpop.f32.mrb[5].mxu1  ;;  %v1543_v49 = vpop.f32.mrb[30].mxu0 }
 0x222   : > { %v1544_v50 = vpop.f32.mrb[31].mxu0 }
 0x223   : > { %v730_v57 = vmul.f32 0.01, %v675_v55  ;;  %1783 = vmatmul.mubr.f32.gmra.mrb[28].mxu1 %v742_v54  ;;  %v1545_v16 = vadd.f32 %v1544_v50, %v1543_v49 }
 0x224   : > { %v679_v21 = vpop.f32.mrb[6].mxu1  ;;  %1785 = vmatprep.mubr.msk.f32.mxu1 %vm2199_vm0, %v2200_v1 }
 0x225   : > { %v743_v58 = vmax.f32 %v675_v55, %v730_v57  ;;  %v680_v59 = vadd.f32 %v2590_v30, %v679_v21  ;;  %v1719_v60 = vpop.f32.mrb[7].mxu1  ;;  %v1546_v51 = vpop.f32.mrb[32].mxu0 }
 0x226   : > { %v1547_v53 = vpop.f32.mrb[33].mxu0 }
 0x227   : > { %v731_v61 = vmul.f32 0.01, %v680_v59  ;;  %1786 = vmatmul.mubr.f32.gmra.mrb[30].mxu1 %v743_v58  ;;  %v1548_v54 = vadd.f32 %v1547_v53, %v1546_v51 }
 0x228   : > { %v684_v63 = vpop.f32.mrb[8].mxu1  ;;  %1788 = vmatprep.mubr.msk.f32.mxu1 %vm2199_vm0, %v2200_v1 }
 0x229   : > { %v744_v3 = vmax.f32 %v680_v59, %v731_v61  ;;  %v685_v23 = vadd.f32 %v2590_v30, %v684_v63  ;;  %v1722_v4 = vpop.f32.mrb[9].mxu1  ;;  %v1549_v55 = vpop.f32.mrb[34].mxu0 }
 0x22a   : > { %v1550_v56 = vpop.f32.mrb[35].mxu0 }
 0x22b   : > { %v732_v5 = vmul.f32 0.01, %v685_v23  ;;  %1789 = vmatmul.mubr.f32.gmra.mrb[32].mxu1 %v744_v3  ;;  %v1551_v57 = vadd.f32 %v1550_v56, %v1549_v55 }
 0x22c   : > { %v689_v6 = vpop.f32.mrb[10].mxu1  ;;  %1791 = vmatprep.mubr.msk.f32.mxu1 %vm2199_vm0, %v2200_v1 }
 0x22d   : > { %v745_v7 = vmax.f32 %v685_v23, %v732_v5  ;;  %v690_v8 = vadd.f32 %v2590_v30, %v689_v6  ;;  %v1725_v24 = vpop.f32.mrb[11].mxu1  ;;  %v1552_v21 = vpop.f32.mrb[36].mxu0 }
 0x22e   : > { %v1553_v58 = vpop.f32.mrb[37].mxu0 }
 0x22f   : > { %v733_v10 = vmul.f32 0.01, %v690_v8  ;;  %1792 = vmatmul.mubr.f32.gmra.mrb[34].mxu1 %v745_v7 }
 0x230   : > { %v694_v11 = vpop.f32.mrb[12].mxu1  ;;  %1794 = vmatprep.mubr.msk.f32.mxu1 %vm2199_vm0, %v2200_v1 }
 0x231   : > { %v746_v12 = vmax.f32 %v690_v8, %v733_v10  ;;  %v695_v13 = vadd.f32 %v2590_v30, %v694_v11  ;;  %v1728_v14 = vpop.f32.mrb[13].mxu1  ;;  %v1555_v59 = vpop.f32.mrb[38].mxu0 }
 0x232   : > { %v1556_v60 = vpop.f32.mrb[39].mxu0 }
 0x233   : > { %v734_v15 = vmul.f32 0.01, %v695_v13  ;;  %1795 = vmatmul.mubr.f32.gmra.mrb[36].mxu1 %v746_v12  ;;  %v1557_v61 = vadd.f32 %v1556_v60, %v1555_v59 }
 0x234   : > { %v699_v25 = vpop.f32.mrb[14].mxu1  ;;  %1797 = vmatprep.mubr.msk.f32.mxu1 %vm2199_vm0, %v2200_v1 }
 0x235   : > { %v747_v17 = vmax.f32 %v695_v13, %v734_v15  ;;  %v700_v18 = vadd.f32 %v2590_v30, %v699_v25  ;;  %v1731_v19 = vpop.f32.mrb[15].mxu1  ;;  %v1558_v63 = vpop.f32.mrb[40].mxu0 }
 0x236   : > { %v1559_v3 = vpop.f32.mrb[41].mxu0 }
 0x237   : > { %v735_v20 = vmul.f32 0.01, %v700_v18  ;;  %1798 = vmatmul.mubr.f32.gmra.mrb[38].mxu1 %v747_v17 }
 0x238   : > { %v704_v26 = vpop.f32.mrb[16].mxu1  ;;  %1800 = vmatprep.mubr.msk.f32.mxu1 %vm2199_vm0, %v2200_v1 }
 0x239   : > { %v748_v22 = vmax.f32 %v700_v18, %v735_v20  ;;  %v705_v32 = vadd.f32 %v2590_v30, %v704_v26  ;;  %v1734_v33 = vpop.f32.mrb[17].mxu1  ;;  %v1561_v23 = vpop.f32.mrb[42].mxu0  ;;  %v2641_v18 = vld [vmem:[%s2783_s6] ss:$0 sm:$0xff] }
 0x23a   : > { %v1562_v4 = vpop.f32.mrb[43].mxu0  ;;  %v928_v19 = vadd.f32 %v2593_v46, %v2641_v18  ;;  %v938_v46 = vadd.f32 %v1545_v16, %v2641_v18 }
 0x23b   : > { %v736_v34 = vmul.f32 0.01, %v705_v32  ;;  %1801 = vmatmul.mubr.f32.gmra.mrb[40].mxu1 %v748_v22  ;;  %v1563_v5 = vadd.f32 %v1562_v4, %v1561_v23 }
 0x23c   : > { %v709_v27 = vpop.f32.mrb[18].mxu1  ;;  %1803 = vmatprep.mubr.msk.f32.mxu1 %vm2199_vm0, %v2200_v1 }
 0x23d   : > { %v749_v35 = vmax.f32 %v705_v32, %v736_v34  ;;  %v710_v36 = vadd.f32 %v2590_v30, %v709_v27  ;;  %v1737_v2 = vpop.f32.mrb[19].mxu1  ;;  %v1564_v6 = vpop.f32.mrb[44].mxu0  ;;  %v933_v32 = vadd.f32 %v2596_v52, %v2641_v18  ;;  %v943_v52 = vadd.f32 %v1548_v54, %v2641_v18 }
 0x23e   : > { %v1565_v7 = vpop.f32.mrb[45].mxu0  ;;  %v968_v16 = vadd.f32 %v1563_v5, %v2641_v18 }
 0x23f   : > { %v737_v37 = vmul.f32 0.01, %v710_v36  ;;  %1804 = vmatmul.mubr.f32.gmra.mrb[42].mxu1 %v749_v35  ;;  %v1566_v8 = vadd.f32 %v1565_v7, %v1564_v6 }
 0x240   : > { %v714_v28 = vpop.f32.mrb[20].mxu1  ;;  %1806 = vmatprep.mubr.msk.f32.mxu1 %vm2199_vm0, %v2200_v1 }
 0x241   : > { %v750_v29 = vmax.f32 %v710_v36, %v737_v37  ;;  %v715_v38 = vadd.f32 %v2590_v30, %v714_v28  ;;  %v1740_v62 = vpop.f32.mrb[21].mxu1  ;;  %v1567_v24 = vpop.f32.mrb[46].mxu0  ;;  %v973_v55 = vadd.f32 %v1566_v8, %v2641_v18 }
 0x242   : > { %v1568_v10 = vpop.f32.mrb[47].mxu0 }
 0x243   : > { %v738_v39 = vmul.f32 0.01, %v715_v38  ;;  %1807 = vmatmul.mubr.f32.gmra.mrb[44].mxu1 %v750_v29  ;;  %v1569_v11 = vadd.f32 %v1568_v10, %v1567_v24 }
 0x244   : > { %v719_v40 = vpop.f32.mrb[22].mxu1  ;;  %1809 = vmatprep.mubr.msk.f32.mxu1 %vm2199_vm0, %v2200_v1 }
 0x245   : > { %v751_v41 = vmax.f32 %v715_v38, %v738_v39  ;;  %v720_v42 = vadd.f32 %v2590_v30, %v719_v40  ;;  %v1743_v43 = vpop.f32.mrb[23].mxu1  ;;  %v1570_v12 = vpop.f32.mrb[48].mxu0  ;;  %v948_v38 = vadd.f32 %v1551_v57, %v2641_v18 }
 0x246   : > { %v1571_v13 = vpop.f32.mrb[49].mxu0 }
 0x247   : > { %v739_v9 = vmul.f32 0.01, %v720_v42  ;;  %1810 = vmatmul.mubr.f32.gmra.mrb[46].mxu1 %v751_v41  ;;  %v2633_v14 = vadd.f32 %v1571_v13, %v1570_v12 }
 0x248   : > { %v724_v31 = vpop.f32.mrb[24].mxu1  ;;  %1812 = vmatprep.mubr.msk.f32.mxu1 %vm2199_vm0, %v2200_v1 }
 0x249   : > { %v752_v44 = vmax.f32 %v720_v42, %v739_v9  ;;  %v725_v45 = vadd.f32 %v2590_v30, %v724_v31  ;;  %v1746_v47 = vpop.f32.mrb[25].mxu1  ;;  %v1554_v30 = vadd.f32 %v1553_v58, %v1552_v21  ;;  %v1573_v15 = vpop.f32.mrb[50].mxu0  ;;  %v958_v31 = vadd.f32 %v1557_v61, %v2641_v18 }
 0x24a   : > { %v1574_v25 = vpop.f32.mrb[51].mxu0  ;;  %v978_v58 = vadd.f32 %v1569_v11, %v2641_v18  ;;  %v983_v61 = vadd.f32 %v2633_v14, %v2641_v18 }
 0x24b   : > { %v740_v0 = vmul.f32 0.01, %v725_v45  ;;  %1813 = vmatmul.mubr.f32.gmra.mrb[48].mxu1 %v752_v44  ;;  %v2635_v17 = vadd.f32 %v1574_v25, %v1573_v15  ;;  %v953_v41 = vadd.f32 %v1554_v30, %v2641_v18 }
 0x24c   : > { %1815 = vmatprep.mubr.msk.f32.mxu1 %vm2199_vm0, %v2200_v1  ;;  %v1560_v1 = vadd.f32 %v1559_v3, %v1558_v63 }
 0x24d   : > { %v753_v48 = vmax.f32 %v725_v45, %v740_v0  ;;  %v988_v23 = vadd.f32 %v2635_v17, %v2641_v18 }
 0x24e   : > { %v963_v0 = vadd.f32 %v1560_v1, %v2641_v18 }
 0x24f   : > { %1816 = vmatmul.mubr.f32.gmra.mrb[50].mxu1 %v753_v48 }
 0x2f2   : > { %v1057_v20 = vpop.f32.mrb[26].mxu1 }
 0x2f3   : > { %v1058_v26 = vadd.f32 %v1057_v20, %v928_v19  ;;  %v1781_v22 = vpop.f32.mrb[27].mxu1 }
 0x2f5   : > { %1122 = vst.msk [vmem:[%s2647_s12] sm:$0xff] %vm1121_vm2, %v1058_v26 }
 0x2f6   : > { %v1062_v33 = vpop.f32.mrb[28].mxu1 }
 0x2f7   : > { %v1063_v34 = vadd.f32 %v1062_v33, %v933_v32  ;;  %v1784_v27 = vpop.f32.mrb[29].mxu1 }
 0x2f9   : > { %1123 = vst.msk [vmem:[%s2647_s12 + $0x8] sm:$0xff] %vm1121_vm2, %v1063_v34 }
 0x2fa   : > { %v1067_v35 = vpop.f32.mrb[30].mxu1 }
 0x2fb   : > { %v1068_v36 = vadd.f32 %v1067_v35, %v938_v46  ;;  %v1787_v2 = vpop.f32.mrb[31].mxu1 }
 0x2fd   : > { %1124 = vst.msk [vmem:[%s2647_s12 + $0x10] sm:$0xff] %vm1121_vm2, %v1068_v36 }
 0x2fe   : > { %v1072_v37 = vpop.f32.mrb[32].mxu1 }
 0x2ff   : > { %v1073_v28 = vadd.f32 %v1072_v37, %v943_v52  ;;  %v1790_v29 = vpop.f32.mrb[33].mxu1 }
 0x301   : > { %1125 = vst.msk [vmem:[%s2647_s12 + $0x18] sm:$0xff] %vm1121_vm2, %v1073_v28 }
 0x302   : > { %v1077_v62 = vpop.f32.mrb[34].mxu1 }
 0x303   : > { %v1078_v39 = vadd.f32 %v1077_v62, %v948_v38  ;;  %v1793_v40 = vpop.f32.mrb[35].mxu1 }
 0x305   : > { %1126 = vst.msk [vmem:[%s2647_s12 + $0x20] sm:$0xff] %vm1121_vm2, %v1078_v39 }
 0x306   : > { %v1082_v42 = vpop.f32.mrb[36].mxu1 }
 0x307   : > { %v1083_v43 = vadd.f32 %v1082_v42, %v953_v41  ;;  %v1796_v9 = vpop.f32.mrb[37].mxu1 }
 0x309   : > { %1127 = vst.msk [vmem:[%s2647_s12 + $0x28] sm:$0xff] %vm1121_vm2, %v1083_v43 }
 0x30a   : > { %v1087_v44 = vpop.f32.mrb[38].mxu1 }
 0x30b   : > { %v1088_v45 = vadd.f32 %v1087_v44, %v958_v31  ;;  %v1799_v47 = vpop.f32.mrb[39].mxu1 }
 0x30d   : > { %1128 = vst.msk [vmem:[%s2647_s12 + $0x30] sm:$0xff] %vm1121_vm2, %v1088_v45 }
 0x30e   : > { %v1092_v48 = vpop.f32.mrb[40].mxu1 }
 0x30f   : > { %v1093_v49 = vadd.f32 %v1092_v48, %v963_v0  ;;  %v1802_v50 = vpop.f32.mrb[41].mxu1 }
 0x311   : > { %1129 = vst.msk [vmem:[%s2647_s12 + $0x38] sm:$0xff] %vm1121_vm2, %v1093_v49 }
 0x312   : > { %v1097_v51 = vpop.f32.mrb[42].mxu1 }
 0x313   : > { %v1098_v53 = vadd.f32 %v1097_v51, %v968_v16  ;;  %v1805_v54 = vpop.f32.mrb[43].mxu1 }
 0x315   : > { %1130 = vst.msk [vmem:[%s2647_s12 + $0x40] sm:$0xff] %vm1121_vm2, %v1098_v53 }
 0x316   : > { %v1102_v56 = vpop.f32.mrb[44].mxu1 }
 0x317   : > { %v1103_v57 = vadd.f32 %v1102_v56, %v973_v55  ;;  %v1808_v21 = vpop.f32.mrb[45].mxu1 }
 0x319   : > { %1131 = vst.msk [vmem:[%s2647_s12 + $0x48] sm:$0xff] %vm1121_vm2, %v1103_v57 }
 0x31a   : > { %v1107_v30 = vpop.f32.mrb[46].mxu1 }
 0x31b   : > { %v1108_v59 = vadd.f32 %v1107_v30, %v978_v58  ;;  %v1811_v60 = vpop.f32.mrb[47].mxu1 }
 0x31d   : > { %1132 = vst.msk [vmem:[%s2647_s12 + $0x50] sm:$0xff] %vm1121_vm2, %v1108_v59 }
 0x31e   : > { %v1112_v63 = vpop.f32.mrb[48].mxu1 }
 0x31f   : > { %v1113_v3 = vadd.f32 %v1112_v63, %v983_v61  ;;  %v1814_v1 = vpop.f32.mrb[49].mxu1  ;;  %1141 = sbr.rel (!%p2795_p12) target bundleno = 867 (0x363), region = 60 }
 0x321   : > { %1133 = vst.msk [vmem:[%s2647_s12 + $0x58] sm:$0xff] %vm1121_vm2, %v1113_v3 }
 0x322   : > { %v1117_v4 = vpop.f32.mrb[50].mxu1 }
 0x323   : > { %v1118_v5 = vadd.f32 %v1117_v4, %v988_v23  ;;  %v1817_v6 = vpop.f32.mrb[51].mxu1 }
 0x325   : > { %1134 = vst.msk [vmem:[%s2647_s12 + $0x60] sm:$0xff] %vm1121_vm2, %v1118_v5 }
 0x326   : > { %s2803_s24 = smov (!%p1144_p13, %s1143_s24), 13 }
 0x327   : > { %s1434_s26 = sshll.u32 %s2803_s24, 7 }
 0x328   : > { %p1437_p0 = scmp.eq.s32.totalorder %s1434_s26, 0 }
 0x329   : > { %2038 = sdivrem.u32 (!%p1437_p0), %s2803_s24, 13 }
 0x32a   : > { %1152 = sbr.rel (%p1437_p0) target bundleno = 867 (0x363), region = 64 }
 0x332   : > { %s2701_s9 = spop.drf %2038 }
 0x333   : > { %p1438_p1 = scmp.le.s32.totalorder %s2701_s9, 0 }
 0x334   : > { %s2796_s27 = smov (!%p1438_p1), %s2695_s15  ;;  %s2797_s13 = smov (!%p1438_p1), %s2647_s12 }
 0x335   : > { %1360 = sbr.rel (%p1438_p1) target bundleno = 838 (0x346), region = 141  ;;  %s2710_s29 = smov (!%p1438_p1), 0  }
 0x336   : > { %s2712_s30 = smov (!%p1438_p1), 0  }
 0x33c LB: >> { %v1240_v7 = vld [vmem:[%s2168_s13] sm:$0xff]  ;;  %v1242_v8 = vld [vmem:[%s2168_s13 + $0x8] sm:$0xff]  ;;  %v1244_v24 = vld [vmem:[%s2168_s13 + $0x10] sm:$0xff]  ;;  %s1266_s11 = sadd.s32 1, %s2172_s29  ;;  %s1234_s30 = sadd.s32 1, %s2176_s30   ;;  %s2176_s30 = sphi %s2712_s30, %s1234_s30   ;;  %s2172_s29 = sphi %s2710_s29, %s2798_s29   ;;  %s2168_s13 = sphi %s2797_s13, %s1271_s13   ;;  %s2164_s27 = sphi %s2796_s27, %s1272_s27  }
 0x33d   : >> { %1241 = vst [vmem:[%s2164_s27] sm:$0xff] %v1240_v7  ;;  %1243 = vst [vmem:[%s2164_s27 + $0x8] sm:$0xff] %v1242_v8  ;;  %v1246_v10 = vld [vmem:[%s2168_s13 + $0x18] sm:$0xff]  ;;  %v1248_v11 = vld [vmem:[%s2168_s13 + $0x20] sm:$0xff]  ;;  %p1267_p2 = scmp.ge.s32.totalorder %s1266_s11, %s2701_s9  ;;  %p1233_p3 = scmp.ge.s32.totalorder %s1234_s30, %s2701_s9 }
 0x33e   : >> { %1245 = vst [vmem:[%s2164_s27 + $0x10] sm:$0xff] %v1244_v24  ;;  %v1250_v12 = vld [vmem:[%s2168_s13 + $0x28] sm:$0xff]  ;;  %1247 = vst [vmem:[%s2164_s27 + $0x18] sm:$0xff] %v1246_v10  ;;  %v1252_v13 = vld [vmem:[%s2168_s13 + $0x30] sm:$0xff] }
 0x33f   : >> { %1249 = vst [vmem:[%s2164_s27 + $0x20] sm:$0xff] %v1248_v11  ;;  %1251 = vst [vmem:[%s2164_s27 + $0x28] sm:$0xff] %v1250_v12  ;;  %v1254_v14 = vld [vmem:[%s2168_s13 + $0x38] sm:$0xff]  ;;  %v1256_v15 = vld [vmem:[%s2168_s13 + $0x40] sm:$0xff]  ;;  %s2805_s11 = smov (%p1267_p2, %s1266_s11), 0  ;;  %1236 = sbr.rel (!%p1233_p3) target bundleno = 828 (0x33c), region = 147 }
 0x340   : >> { %1253 = vst [vmem:[%s2164_s27 + $0x30] sm:$0xff] %v1252_v13  ;;  %1255 = vst [vmem:[%s2164_s27 + $0x38] sm:$0xff] %v1254_v14  ;;  %v1258_v25 = vld [vmem:[%s2168_s13 + $0x48] sm:$0xff]  ;;  %v1260_v17 = vld [vmem:[%s2168_s13 + $0x50] sm:$0xff]  ;;  %s1269_s14 = smul.u32 104, %s2805_s11  ;;  %s2798_s29 = smov %s2805_s11 }
 0x341   : >> { %1257 = vst [vmem:[%s2164_s27 + $0x40] sm:$0xff] %v1256_v15  ;;  %v1262_v18 = vld [vmem:[%s2168_s13 + $0x58] sm:$0xff]  ;;  %1259 = vst [vmem:[%s2164_s27 + $0x48] sm:$0xff] %v1258_v25  ;;  %v1264_v19 = vld [vmem:[%s2168_s13 + $0x60] sm:$0xff] }
 0x342   : >> { %1261 = vst [vmem:[%s2164_s27 + $0x50] sm:$0xff] %v1260_v17  ;;  %1263 = vst [vmem:[%s2164_s27 + $0x58] sm:$0xff] %v1262_v18  ;;  %s1271_s13 = scalar_lea.vmem %s2647_s12, %s1269_s14 [#allocation7]  }
 0x343   : >> { %1265 = vst [vmem:[%s2164_s27 + $0x60] sm:$0xff] %v1264_v19  ;;  %s1272_s27 = scalar_lea.vmem %s2695_s15, %s1269_s14  }
 0x346 PF: > { %2040 = sdivrem.u32 %s2803_s24, 13 }
 0x347   : > { %s1439_s16 = smul.u32 104, %s2701_s9 }
 0x349   : > { %s1277_s17 = scalar_lea.vmem %s2647_s12, %s1439_s16 [#allocation7]   ;;  %s1279_s18 = scalar_lea.vmem %s2695_s15, %s1439_s16  }
 0x34f   : > { %s2041_s19 = spop.drf %2040 }
 0x350   : > { %p1441_p5 = scmp.le.s32.totalorder %s2041_s19, 0 }
 0x351   : > { %s2178_s20 = smov (!%p1441_p5), %s1279_s18   ;;  %s2182_s21 = smov (!%p1441_p5), %s1277_s17  }
 0x352   : > { %1374 = sbr.rel (%p1441_p5) target bundleno = 867 (0x363), region = 152  ;;  %s2186_s22 = smov (!%p1441_p5), 0  }
 0x353   : > { %s2190_s23 = smov (!%p1441_p5), 0  }
 0x359 LB: >> { %v1289_v20 = vld [vmem:[%s2184_s21] sm:$0xff]  ;;  %s1291_s10 = sadd.s32 1, %s2188_s22  ;;  %s1283_s23 = sadd.s32 1, %s2192_s23   ;;  %s2192_s23 = sphi %s2190_s23, %s1283_s23   ;;  %s2188_s22 = sphi %s2186_s22, %s2187_s22   ;;  %s2184_s21 = sphi %s2182_s21, %s1296_s21   ;;  %s2180_s20 = sphi %s2178_s20, %s1297_s20  }
 0x35a   : >> { %1290 = vst [vmem:[%s2180_s20] sm:$0xff] %v1289_v20  ;;  %p1292_p8 = scmp.ge.s32.totalorder %s1291_s10, %s2041_s19  ;;  %p1282_p10 = scmp.ge.s32.totalorder %s1283_s23, %s2041_s19 }
 0x35c   : >> { %s2807_s10 = smov (%p1292_p8, %s1291_s10), 0  ;;  %1285 = sbr.rel (!%p1282_p10) target bundleno = 857 (0x359), region = 158 }
 0x35d   : >> { %s1442_s12 = sshll.u32 %s2807_s10, 3  ;;  %s2187_s22 = smov %s2807_s10  }
 0x35e   : >> { %s1296_s21 = scalar_lea.vmem %s1277_s17, %s1442_s12 [#allocation7]   ;;  %s1297_s20 = scalar_lea.vmem %s1279_s18, %s1442_s12  }
 0x363 PF: > { %p16_p4 = scmp.ge.s32.totalorder %s2256_s28, 4   ;;  %s2799_s24 = smov %s2156_s25 }
 0x364   : > { %s2800_s25 = smov %s2264_s8  ;;  %s2801_s26 = smov %s2256_s28 }
 0x365   :  { %18 = sbr.rel (!%p16_p4) target bundleno = 3 (0x3), region = 169 }
 0x36c   :  { %1313 = vsyncpa [#allocation4], 1 }
 0x36d   :  { %1315 = vsyncpa [#allocation4 + $0x1], 1 }
 0x36e   :  { %1316 = vsyncpa [#allocation6], 1 }

// kernel: tpu_custom_call.1
= control target key start
LH: loop header
LB: loop body
LE: loop exit
PB: predicated region body
PF: predicated region fallthrough
CT: control target
= control target key end

     0   :  { %12 = vsyncpa [#allocation4], 0  ;;  %s2777_s0 = inlined_call_operand.vmem [shape: f32[200,16], index: 0, kind: input, shape index: {}]   ;;  %s2778_s1 = inlined_call_operand.vmem [shape: f32[128,128], index: 1, kind: input, shape index: {}]   ;;  %s2779_s2 = inlined_call_operand.hbm [shape: f32[128,128], index: 2, kind: input, shape index: {}]   ;;  %s2780_s3 = inlined_call_operand.vmem [shape: f32[1,128], index: 3, kind: input, shape index: {}]   ;;  %s2781_s4 = inlined_call_operand.vmem [shape: f32[1,128], index: 4, kind: input, shape index: {}]   ;;  %s2782_s5 = inlined_call_operand.hbm [shape: f32[384,128], index: 5, kind: input, shape index: {}]   ;;  %s2783_s6 = inlined_call_operand.vmem [shape: f32[1,128], index: 6, kind: input, shape index: {}]   ;;  %s2784_s7 = inlined_call_operand.vmem [shape: f32[200,8], index: 7, kind: output, shape index: {}]  }
   0x1   :  { %13 = vsyncpa [#allocation6], 0  ;;  %s2241_s24 = smov 0   ;;  %s2243_s25 = smov 0  }
   0x2   :  { %s2245_s26 = smov 0  }
   0x3 LB: > { %s2254_s27 = sadd.s32 4294967295, %s2160_s26   ;;  %s2256_s28 = sadd.s32 1, %s2160_s26   ;;  %s2160_s26 = sphi %s2245_s26, %s2801_s26   ;;  %s2156_s25 = sphi %s2243_s25, %s2800_s25   ;;  %s2152_s24 = sphi %s2241_s24, %s2799_s24  }
   0x4   : > { %s175_s29 = ssub.s32 %s2160_s26, %s2256_s28  ;;  %s178_s30 = sadd.s32 1, %s2156_s25 }
   0x5   : > { %p176_p0 = scmp.eq.s32.totalorder %s175_s29, 0  ;;  %p188_p1 = scmp.ne.s32.totalorder %s2156_s25, %s2152_s24 }
   0x6   : > { %p189_p2 = scmp.eq.s32.totalorder %s2254_s27, 1  ;;  %p1423_p3 = scmp.ge.s32.totalorder %s2160_s26, 1 }
   0x7   : > { %s2264_s8 = scalar_select %p176_p0, %s2156_s25, %s178_s30  }
   0x8   : > { %p2266_p4 = por %p189_p2, %p188_p1  ;;  %p202_p5 = scmp.lt.s32.totalorder %s2160_s26, 3 }
   0x9   : > { %p2785_p6 = scmp.eq.s32.totalorder %s2254_s27, 0  ;;  %s2194_s11 = smov [#allocation3]  }
   0xa   : > { %s2787_s9 = scalar_select %p2266_p4, 1, 0 }
   0xb   : > { %p2271_p7 = pnand %p1423_p3, %p202_p5  ;;  %s217_s12 = sshll.u32 %s2194_s11, 4  ;;  %s218_s12 = int_to_ptr.vmem [resolvable:$true] %s217_s12 }
   0xc   : > { %s2195_s14 = smov [#allocation5]   ;;  %s2042_s18 = scalar_lea.hbm %s2779_s2, 2048 }
   0xd   : > { %s2788_s10 = scalar_select %p2271_p7, 1, 0 }
   0xe   : > { %p1931_p8 = pneg %p2271_p7  ;;  %s236_s15 = sshll.u32 %s2195_s14, 4  ;;  %s2283_s15 = int_to_ptr.vmem [resolvable:$true] %s236_s15 }
   0xf   : > { %p2043_p10 = scmp.ne.s32.totalorder %s2779_s2, %s2042_s18  ;;  %p2049_p0 = scmp.lt.u32.totalorder %s2042_s18, %s2779_s2 }
  0x10   : > { %p2279_p9 = pnand %p2785_p6, %p1931_p8 }
  0x12   : > { %p2044_p11 = pneg %p2279_p9 }
  0x14   : > { %p2045_p12 = pnand %p2044_p11, %p2043_p10 }
  0x16   : > { %p2046_p13 = pneg %p2045_p12 }
  0x18   : > { %p2051_p1 = pnand %p2049_p0, %p2046_p13 }
  0x1a   : > { %2054 = shalt.err (!%p2051_p1)
}
  0x1b   : > { %s2055_s23 = scalar_lea.vmem %s218_s12, 2048  ;;  %p2063_p8 = scmp.lt.s32.totalorder %s218_s12, %s218_s12 }
  0x1c   : > { %p2056_p2 = scmp.ne.s32.totalorder %s218_s12, %s2055_s23  ;;  %p2064_p6 = scmp.lt.s32.totalorder %s2055_s23, %s2055_s23 }
  0x1e   : > { %p2058_p3 = pnand %p2056_p2, %p2044_p11  ;;  %p2065_p4 = por %p2064_p6, %p2063_p8 }
  0x20   : > { %p2059_p5 = pneg %p2058_p3 }
  0x22   : > { %p2066_p7 = pnand %p2065_p4, %p2059_p5 }
  0x24   : > { %2069 = shalt.err (!%p2066_p7)
}
  0x25   : > { %s2196_s26 = smov 128   ;;  %s2197_s29 = smov 8  }
  0x26   : > { %1934 = dma.hbm_to_vmem [thread:$0]  (!%p2279_p9), %s2779_s2, 2048, %s218_s12, [#allocation4], %s2196_s26, %s2196_s26, %s2197_s29  }
  0x27   : > { %s2070_s17 = scalar_lea.hbm %s2782_s5, 6144 }
  0x28   : > { %p2071_p10 = scmp.ne.s32.totalorder %s2782_s5, %s2070_s17  ;;  %p2077_p7 = scmp.lt.u32.totalorder %s2070_s17, %s2782_s5 }
  0x2a   : > { %p2073_p4 = pnand %p2071_p10, %p2044_p11 }
  0x2c   : > { %p2074_p6 = pneg %p2073_p4 }
  0x2e   : > { %p2079_p12 = pnand %p2077_p7, %p2074_p6 }
  0x30   : > { %2082 = shalt.err (!%p2079_p12)
}
  0x31   : > { %s2083_s12 = scalar_lea.vmem %s2283_s15, 6144  ;;  %p2091_p2 = scmp.lt.s32.totalorder %s2283_s15, %s2283_s15 }
  0x32   : > { %p2084_p13 = scmp.ne.s32.totalorder %s2283_s15, %s2083_s12  ;;  %p2092_p3 = scmp.lt.s32.totalorder %s2083_s12, %s2083_s12 }
  0x34   : > { %p2086_p0 = pnand %p2084_p13, %p2044_p11  ;;  %p2093_p5 = por %p2092_p3, %p2091_p2 }
  0x36   : > { %p2087_p1 = pneg %p2086_p0 }
  0x38   : > { %p2094_p8 = pnand %p2093_p5, %p2087_p1 }
  0x3a   : > { %2097 = shalt.err (!%p2094_p8)
}
  0x3b   : > { %1937 = dma.hbm_to_vmem [thread:$0]  (!%p2279_p9), %s2782_s5, 6144, %s2283_s15, [#allocation6], %s2196_s26, %s2196_s26, %s2197_s29  }
  0x3c   : > { %p2790_p10 = scmp.ne.s32.totalorder %s2788_s10, 0 }
  0x3d   : > { %p2791_p4 = scmp.eq.s32.totalorder (!%p2790_p10), %s2254_s27, 0 }
  0x3e   : > { %272 = sbr.rel (%p2790_p10) target bundleno = 867 (0x363), region = 48 }
  0x45   : > { %2143 = dma.done.wait (%p2791_p4), [#allocation4], 2048   ;;  %p2792_p11 = pmov %p2791_p4 }
  0x46   : > { %p2793_p6 = pmov %p2791_p4 }
  0x47   : > { %2145 = vsyncadd (%p2792_p11), [#allocation4], 4294965248 }
  0x48   : > { %2147 = dma.done.wait (%p2793_p6), [#allocation6], 6144   ;;  %p2794_p7 = pmov %p2791_p4 }
  0x49   : > { %s2343_s13 = smul.u32 13, %s2254_s27  ;;  %v2198_v0 = vmov 0.0|0.0   ;;  %vm2199_vm0 = vmmov 0   ;;  %v2200_v1 = vmov 0.0   ;;  %v383_v2 = vld [vmem:[%s2778_s1] sm:$0xff]  ;;  %v384_v3 = vld [vmem:[%s2778_s1 + $0x8] sm:$0xff] }
  0x4a   : > { %2149 = vsyncadd (%p2794_p7), [#allocation6], 4294961152  ;;  %1818 = vmatprep.subr.bf16.mxu0 %v2198_v0  ;;  %1637 = vmatprep.mubr.msk.f32.mxu0 %vm2199_vm0, %v2200_v1  ;;  %343 = vst [vmem:[#allocation2] sm:$0xff] %v2200_v1  ;;  %v385_v4 = vld [vmem:[%s2778_s1 + $0x10] sm:$0xff]  ;;  %v1819_v5 = vpack.c.bf16 %v384_v3, %v383_v2  ;;  %v386_v6 = vld [vmem:[%s2778_s1 + $0x18] sm:$0xff]  ;;  %vm356_vm1 = vcmask 130048  }
  0x4b   : > { %344 = vst [vmem:[#allocation2 + $0x18] sm:$0xff] %v2200_v1  ;;  %345 = vst [vmem:[#allocation2 + $0x30] sm:$0xff] %v2200_v1  ;;  %p316_p9 = scmp.lt.s32.totalorder %s2343_s13, 24  ;;  %1842 = vmatprep.subr.bf16.mxu1 %v2198_v0  ;;  %1708 = vmatprep.mubr.msk.f32.mxu1 %vm2199_vm0, %v2200_v1  ;;  %v1822_v7 = vpack.c.bf16 %v386_v6, %v385_v4  ;;  %v387_v8 = vld [vmem:[%s2778_s1 + $0x20] sm:$0xff]  ;;  %v388_v9 = vld [vmem:[%s2778_s1 + $0x28] sm:$0xff]  ;;  %s308_s18 = sand.u32 1, %s2152_s24  }
  0x4c   : > { %346 = vst [vmem:[#allocation2 + $0x48] sm:$0xff] %v2200_v1  ;;  %347 = vst [vmem:[#allocation2 + $0x60] sm:$0xff] %v2200_v1  ;;  %1820 = vmatpush3.bf16.msra.mxu0 %v1819_v5  ;;  %v389_v12 = vld [vmem:[%s2778_s1 + $0x30] sm:$0xff]  ;;  %v390_v13 = vld [vmem:[%s2778_s1 + $0x38] sm:$0xff]  ;;  %v1825_v17 = vpack.c.bf16 %v388_v9, %v387_v8  ;;  %vm1121_vm2 = vcmask 64512   ;;  %p2795_p12 = scmp.ne.s32.totalorder %s2787_s9, 0 }
  0x4d   : > { %348 = vst [vmem:[#allocation2 + $0x78] sm:$0xff] %v2200_v1  ;;  %349 = vst [vmem:[#allocation2 + $0x90] sm:$0xff] %v2200_v1  ;;  %s317_s10 = scalar_select %p316_p9, %s2343_s13, 24  ;;  %1821 = vmatprep.subr.bf16.mxu0 %v2198_v0  ;;  %v575_v26 = vld [vmem:[#allocation3] sm:$0xff]  ;;  %v576_v27 = vld [vmem:[#allocation3 + $0x8] sm:$0xff]  ;;  %v1828_v30 = vpack.c.bf16 %v390_v13, %v389_v12 }
  0x4e   : > { %350 = vst [vmem:[#allocation2 + $0xa8] sm:$0xff] %v2200_v1  ;;  %351 = vst [vmem:[#allocation2 + $0xc0] sm:$0xff] %v2200_v1  ;;  %v577_v28 = vld [vmem:[#allocation3 + $0x10] sm:$0xff]  ;;  %v578_v29 = vld [vmem:[#allocation3 + $0x18] sm:$0xff]  ;;  %v1843_v31 = vpack.c.bf16 %v576_v27, %v575_v26  ;;  %s1143_s24 = ssub.s32 (%p2795_p12), 25, %s2343_s13  ;;  %s1446_s22 = smul.u32 (%p2795_p12), 104, %s2254_s27 }
  0x4f   : > { %352 = vst [vmem:[#allocation2 + $0xd8] sm:$0xff] %v2200_v1  ;;  %353 = vst [vmem:[#allocation2 + $0xf0] sm:$0xff] %v2200_v1  ;;  %s1430_s15 = sshll.u32 %s317_s10, 3  ;;  %v391_v32 = vld [vmem:[%s2778_s1 + $0x40] sm:$0xff]  ;;  %v392_v33 = vld [vmem:[%s2778_s1 + $0x48] sm:$0xff]  ;;  %v1846_v34 = vpack.c.bf16 %v578_v29, %v577_v28  ;;  %p1144_p13 = scmp.lt.s32.totalorder (%p2795_p12), %s1143_s24, 13 }
  0x50   : > { %354 = vst [vmem:[#allocation2 + $0x108] sm:$0xff] %v2200_v1  ;;  %355 = vst [vmem:[#allocation2 + $0x120] sm:$0xff] %v2200_v1  ;;  %s2381_s21 = scalar_lea.vmem %s2777_s0, %s1430_s15  ;;  %1823 = vmatpush3.bf16.msra.mxu0 %v1822_v7  ;;  %1844 = vmatpush3.bf16.msra.mxu1 %v1843_v31  ;;  %v579_v35 = vld [vmem:[#allocation3 + $0x20] sm:$0xff]  ;;  %v580_v36 = vld [vmem:[#allocation3 + $0x28] sm:$0xff]  ;;  %v1831_v37 = vpack.c.bf16 %v392_v33, %v391_v32  ;;  %s2695_s15 = scalar_lea.vmem (%p2795_p12), %s2784_s7, %s1446_s22  }
  0x51   : > { %v330_v10 = vld [vmem:[%s2381_s21] sm:$0xff]  ;;  %v331_v11 = vld [vmem:[%s2381_s21 + $0x8] sm:$0xff]  ;;  %v332_v14 = vld [vmem:[%s2381_s21 + $0x10] sm:$0xff]  ;;  %1824 = vmatprep.subr.bf16.mxu0 %v2198_v0  ;;  %1845 = vmatprep.subr.bf16.mxu1 %v2198_v0  ;;  %v1849_v40 = vpack.c.bf16 %v580_v36, %v579_v35 }
  0x52   : > { %357 = vst.msk [vmem:[#allocation2] sm:$0xff] %vm356_vm1, %v330_v10  ;;  %358 = vst.msk [vmem:[#allocation2 + $0x18] sm:$0xff] %vm356_vm1, %v331_v11  ;;  %v333_v15 = vld [vmem:[%s2381_s21 + $0x18] sm:$0xff]  ;;  %v334_v16 = vld [vmem:[%s2381_s21 + $0x20] sm:$0xff] }
  0x53   : > { %359 = vst.msk [vmem:[#allocation2 + $0x30] sm:$0xff] %vm356_vm1, %v332_v14  ;;  %360 = vst.msk [vmem:[#allocation2 + $0x48] sm:$0xff] %vm356_vm1, %v333_v15  ;;  %v335_v18 = vld [vmem:[%s2381_s21 + $0x28] sm:$0xff]  ;;  %v336_v19 = vld [vmem:[%s2381_s21 + $0x30] sm:$0xff] }
  0x54   : > { %361 = vst.msk [vmem:[#allocation2 + $0x60] sm:$0xff] %vm356_vm1, %v334_v16  ;;  %v337_v20 = vld [vmem:[%s2381_s21 + $0x38] sm:$0xff]  ;;  %362 = vst.msk [vmem:[#allocation2 + $0x78] sm:$0xff] %vm356_vm1, %v335_v18  ;;  %v338_v21 = vld [vmem:[%s2381_s21 + $0x40] sm:$0xff]  ;;  %1826 = vmatpush3.bf16.msra.mxu0 %v1825_v17  ;;  %1847 = vmatpush3.bf16.msra.mxu1 %v1846_v34 }
  0x55   : > { %363 = vst.msk [vmem:[#allocation2 + $0x90] sm:$0xff] %vm356_vm1, %v336_v19  ;;  %364 = vst.msk [vmem:[#allocation2 + $0xa8] sm:$0xff] %vm356_vm1, %v337_v20  ;;  %v339_v22 = vld [vmem:[%s2381_s21 + $0x48] sm:$0xff]  ;;  %v340_v23 = vld [vmem:[%s2381_s21 + $0x50] sm:$0xff]  ;;  %1827 = vmatprep.subr.bf16.mxu0 %v2198_v0  ;;  %1848 = vmatprep.subr.bf16.mxu1 %v2198_v0 }
  0x56   : > { %365 = vst.msk [vmem:[#allocation2 + $0xc0] sm:$0xff] %vm356_vm1, %v338_v21  ;;  %366 = vst.msk [vmem:[#allocation2 + $0xd8] sm:$0xff] %vm356_vm1, %v339_v22  ;;  %v341_v24 = vld [vmem:[%s2381_s21 + $0x58] sm:$0xff]  ;;  %v342_v25 = vld [vmem:[%s2381_s21 + $0x60] sm:$0xff]  ;;  %s1922_s21 = smul.u32 104, %s308_s18 }
  0x57   : > { %367 = vst.msk [vmem:[#allocation2 + $0xf0] sm:$0xff] %vm356_vm1, %v340_v23  ;;  %368 = vst.msk [vmem:[#allocation2 + $0x108] sm:$0xff] %vm356_vm1, %v341_v24  ;;  %v393_v38 = vld [vmem:[%s2778_s1 + $0x50] sm:$0xff]  ;;  %v394_v39 = vld [vmem:[%s2778_s1 + $0x58] sm:$0xff] }
  0x58   : > { %369 = vst.msk [vmem:[#allocation2 + $0x120] sm:$0xff] %vm356_vm1, %v342_v25  ;;  %1829 = vmatpush3.bf16.msra.mxu0 %v1828_v30  ;;  %v581_v41 = vld [vmem:[#allocation3 + $0x30] sm:$0xff]  ;;  %v582_v42 = vld [vmem:[#allocation3 + $0x38] sm:$0xff]  ;;  %v1834_v43 = vpack.c.bf16 %v394_v39, %v393_v38  ;;  %v395_v44 = vld [vmem:[%s2778_s1 + $0x60] sm:$0xff]  ;;  %1850 = vmatpush3.bf16.msra.mxu1 %v1849_v40  ;;  %s2647_s12 = scalar_lea.vmem [#allocation7], %s1922_s21  }
  0x59   : > { %1830 = vmatprep.subr.bf16.mxu0 %v2198_v0  ;;  %v396_v45 = vld [vmem:[%s2778_s1 + $0x68] sm:$0xff]  ;;  %v1852_v46 = vpack.c.bf16 %v582_v42, %v581_v41  ;;  %1851 = vmatprep.subr.bf16.mxu1 %v2198_v0  ;;  %v583_v47 = vld [vmem:[#allocation3 + $0x40] sm:$0xff]  ;;  %v584_v48 = vld [vmem:[#allocation3 + $0x48] sm:$0xff] }
  0x5a   : > { %v1837_v49 = vpack.c.bf16 %v396_v45, %v395_v44  ;;  %v397_v50 = vld [vmem:[%s2778_s1 + $0x70] sm:$0xff]  ;;  %v398_v51 = vld [vmem:[%s2778_s1 + $0x78] sm:$0xff]  ;;  %v823_v53 = vld [vmem:[#allocation5 + $0x88] sm:$0xff]  ;;  %v1855_v54 = vpack.c.bf16 %v584_v48, %v583_v47 }
  0x5b   : > { %v822_v52 = vld [vmem:[#allocation5 + $0x80] sm:$0xff]  ;;  %v585_v55 = vld [vmem:[#allocation3 + $0x50] sm:$0xff]  ;;  %v586_v56 = vld [vmem:[#allocation3 + $0x58] sm:$0xff]  ;;  %v1840_v57 = vpack.c.bf16 %v398_v51, %v397_v50 }
  0x5c   : > { %1832 = vmatpush3.bf16.msra.mxu0 %v1831_v37  ;;  %1853 = vmatpush3.bf16.msra.mxu1 %v1852_v46  ;;  %v1866_v58 = vpack.c.bf16 %v823_v53, %v822_v52  ;;  %v806_v59 = vld [vmem:[#allocation5] sm:$0xff]  ;;  %v807_v60 = vld [vmem:[#allocation5 + $0x8] sm:$0xff]  ;;  %v824_v61 = vld [vmem:[#allocation5 + $0x90] sm:$0xff]  ;;  %v1858_v63 = vpack.c.bf16 %v586_v56, %v585_v55 }
  0x5d   : > { %1833 = vmatprep.subr.bf16.mxu0 %v2198_v0  ;;  %1854 = vmatprep.subr.bf16.mxu1 %v2198_v0  ;;  %v825_v62 = vld [vmem:[#allocation5 + $0x98] sm:$0xff]  ;;  %v2457_v2 = vld [vmem:[#allocation2] sm:$0xff]  ;;  %v1868_v3 = vpack.c.bf16 %v807_v60, %v806_v59  ;;  %v808_v5 = vld [vmem:[#allocation5 + $0x10] sm:$0xff] }
  0x5e   : > { %v1870_v4 = vpack.c.bf16 %v825_v62, %v824_v61  ;;  %v809_v6 = vld [vmem:[#allocation5 + $0x18] sm:$0xff]  ;;  %v826_v7 = vld [vmem:[#allocation5 + $0xa0] sm:$0xff]  ;;  %v827_v8 = vld [vmem:[#allocation5 + $0xa8] sm:$0xff] }
  0x5f   : > { %v2463_v9 = vld [vmem:[#allocation2 + $0x18] sm:$0xff]  ;;  %v1872_v10 = vpack.c.bf16 %v809_v6, %v808_v5  ;;  %v1874_v11 = vpack.c.bf16 %v827_v8, %v826_v7  ;;  %v811_v13 = vld [vmem:[#allocation5 + $0x28] sm:$0xff]  ;;  %v828_v14 = vld [vmem:[#allocation5 + $0xb0] sm:$0xff] }
  0x60   : > { %1835 = vmatpush3.bf16.msra.mxu0 %v1834_v43  ;;  %1856 = vmatpush3.bf16.msra.mxu1 %v1855_v54  ;;  %v810_v12 = vld [vmem:[#allocation5 + $0x20] sm:$0xff]  ;;  %v829_v15 = vld [vmem:[#allocation5 + $0xb8] sm:$0xff]  ;;  %v812_v19 = vld [vmem:[#allocation5 + $0x30] sm:$0xff] }
  0x61   : > { %1836 = vmatprep.subr.bf16.mxu0 %v2198_v0  ;;  %1857 = vmatprep.subr.bf16.mxu1 %v2198_v0  ;;  %v2468_v16 = vld [vmem:[#allocation2 + $0x30] sm:$0xff]  ;;  %v1876_v17 = vpack.c.bf16 %v811_v13, %v810_v12  ;;  %v1878_v18 = vpack.c.bf16 %v829_v15, %v828_v14  ;;  %v2473_v21 = vld [vmem:[#allocation2 + $0x48] sm:$0xff]  ;;  %v2478_v23 = vld [vmem:[#allocation2 + $0x60] sm:$0xff] }
  0x62   : > { %v813_v20 = vld [vmem:[#allocation5 + $0x38] sm:$0xff]  ;;  %v2483_v24 = vld [vmem:[#allocation2 + $0x78] sm:$0xff]  ;;  %v2493_v26 = vld [vmem:[#allocation2 + $0xa8] sm:$0xff] }
  0x63   : > { %v1880_v22 = vpack.c.bf16 %v813_v20, %v812_v19  ;;  %v2488_v25 = vld [vmem:[#allocation2 + $0x90] sm:$0xff]  ;;  %v2498_v27 = vld [vmem:[#allocation2 + $0xc0] sm:$0xff]  ;;  %v2503_v28 = vld [vmem:[#allocation2 + $0xd8] sm:$0xff] }
  0x64   : > { %1838 = vmatpush3.bf16.msra.mxu0 %v1837_v49  ;;  %1859 = vmatpush3.bf16.msra.mxu1 %v1858_v63  ;;  %v2508_v29 = vld [vmem:[#allocation2 + $0xf0] sm:$0xff]  ;;  %v2513_v30 = vld [vmem:[#allocation2 + $0x108] sm:$0xff]  ;;  %v2518_v31 = vld [vmem:[#allocation2 + $0x120] sm:$0xff] }
  0x65   : > { %1839 = vmatprep.subr.bf16.mxu0 %v2198_v0  ;;  %1860 = vmatprep.subr.bf16.mxu1 %v2198_v0  ;;  %v830_v32 = vld [vmem:[#allocation5 + $0xc0] sm:$0xff]  ;;  %v831_v33 = vld [vmem:[#allocation5 + $0xc8] sm:$0xff]  ;;  %v832_v38 = vld [vmem:[#allocation5 + $0xd0] sm:$0xff] }
  0x66   : > { %v1882_v34 = vpack.c.bf16 %v831_v33, %v830_v32  ;;  %v814_v35 = vld [vmem:[#allocation5 + $0x40] sm:$0xff]  ;;  %v815_v36 = vld [vmem:[#allocation5 + $0x48] sm:$0xff]  ;;  %v833_v39 = vld [vmem:[#allocation5 + $0xd8] sm:$0xff] }
  0x67   : > { %v1884_v37 = vpack.c.bf16 %v815_v36, %v814_v35  ;;  %v1886_v40 = vpack.c.bf16 %v833_v39, %v832_v38  ;;  %v816_v41 = vld [vmem:[#allocation5 + $0x50] sm:$0xff]  ;;  %v817_v42 = vld [vmem:[#allocation5 + $0x58] sm:$0xff]  ;;  %v587_v43 = vld [vmem:[#allocation3 + $0x60] sm:$0xff] }
  0x68   : > { %1841 = vmatpush3.bf16.msra.mxu0 %v1840_v57  ;;  %v588_v44 = vld [vmem:[#allocation3 + $0x68] sm:$0xff]  ;;  %v1888_v45 = vpack.c.bf16 %v817_v42, %v816_v41  ;;  %v834_v47 = vld [vmem:[#allocation5 + $0xe0] sm:$0xff]  ;;  %v589_v52 = vld [vmem:[#allocation3 + $0x70] sm:$0xff] }
  0x69   : > { %1867 = vmatprep.subr.bf16.mxu0 %v1866_v58  ;;  %v1861_v46 = vpack.c.bf16 %v588_v44, %v587_v43  ;;  %v835_v48 = vld [vmem:[#allocation5 + $0xe8] sm:$0xff]  ;;  %v818_v50 = vld [vmem:[#allocation5 + $0x60] sm:$0xff]  ;;  %v590_v53 = vld [vmem:[#allocation3 + $0x78] sm:$0xff] }
  0x6a   : > { %v1890_v49 = vpack.c.bf16 %v835_v48, %v834_v47  ;;  %v819_v51 = vld [vmem:[#allocation5 + $0x68] sm:$0xff]  ;;  %v1864_v55 = vpack.c.bf16 %v590_v53, %v589_v52  ;;  %v836_v56 = vld [vmem:[#allocation5 + $0xf0] sm:$0xff]  ;;  %v837_v57 = vld [vmem:[#allocation5 + $0xf8] sm:$0xff] }
  0x6b   : > { %1638 = vmatmul.mubr.f32.vlgmr.msra.gmra.mrb[0].mxu0 %v2457_v2  ;;  %1862 = vmatpush3.bf16.msra.mxu1 %v1861_v46  ;;  %v1892_v54 = vpack.c.bf16 %v819_v51, %v818_v50  ;;  %v1894_v58 = vpack.c.bf16 %v837_v57, %v836_v56  ;;  %v820_v59 = vld [vmem:[#allocation5 + $0x70] sm:$0xff]  ;;  %v821_v60 = vld [vmem:[#allocation5 + $0x78] sm:$0xff]  ;;  %v2526_v62 = vld [vmem:[%s2780_s3] ss:$0 sm:$0xff] }
  0x6c   : > { %1640 = vmatprep.mubr.msk.f32.mxu0 %vm2199_vm0, %v2200_v1  ;;  %1869 = vmatpush3.bf16.msra.mxu0 %v1868_v3  ;;  %v1896_v61 = vpack.c.bf16 %v821_v60, %v820_v59  ;;  %v838_v5 = vld [vmem:[#allocation5 + $0x100] sm:$0xff]  ;;  %v839_v6 = vld [vmem:[#allocation5 + $0x108] sm:$0xff]  ;;  %v840_v14 = vld [vmem:[#allocation5 + $0x110] sm:$0xff] }
  0x6d   : > { %1871 = vmatprep.subr.bf16.mxu0 %v1870_v4  ;;  %1863 = vmatprep.subr.bf16.mxu1 %v2198_v0  ;;  %v1899_v13 = vpack.c.bf16 %v839_v6, %v838_v5  ;;  %v841_v15 = vld [vmem:[#allocation5 + $0x118] sm:$0xff]  ;;  %v842_v33 = vld [vmem:[#allocation5 + $0x120] sm:$0xff]  ;;  %v847_v48 = vld [vmem:[#allocation5 + $0x148] sm:$0xff] }
  0x6e   : > { %v1902_v32 = vpack.c.bf16 %v841_v15, %v840_v14  ;;  %v845_v41 = vld [vmem:[#allocation5 + $0x138] sm:$0xff]  ;;  %v846_v47 = vld [vmem:[#allocation5 + $0x140] sm:$0xff] }
  0x6f   : > { %1641 = vmatmul.mubr.f32.gmra.mrb[2].mxu0 %v2463_v9  ;;  %1865 = vmatpush3.bf16.msra.mxu1 %v1864_v55  ;;  %v1911_v53 = vpack.c.bf16 %v847_v48, %v846_v47  ;;  %v849_v55 = vld [vmem:[#allocation5 + $0x158] sm:$0xff] }
  0x70   : > { %1643 = vmatprep.mubr.msk.f32.mxu0 %vm2199_vm0, %v2200_v1  ;;  %1873 = vmatpush3.bf16.msra.mxu0 %v1872_v10 }
  0x71   : > { %1875 = vmatprep.subr.bf16.mxu0 %v1874_v11  ;;  %1898 = vmatprep.subr.bf16.mxu1 %v2198_v0 }
  0x73   : > { %1644 = vmatmul.mubr.f32.gmra.mrb[4].mxu0 %v2468_v16 }
  0x74   : > { %1646 = vmatprep.mubr.msk.f32.mxu0 %vm2199_vm0, %v2200_v1  ;;  %1877 = vmatpush3.bf16.msra.mxu0 %v1876_v17 }
  0x75   : > { %1879 = vmatprep.subr.bf16.mxu0 %v1878_v18 }
  0x77   : > { %1647 = vmatmul.mubr.f32.gmra.mrb[6].mxu0 %v2473_v21 }
  0x78   : > { %1649 = vmatprep.mubr.msk.f32.mxu0 %vm2199_vm0, %v2200_v1  ;;  %1881 = vmatpush3.bf16.msra.mxu0 %v1880_v22 }
  0x79   : > { %1883 = vmatprep.subr.bf16.mxu0 %v1882_v34  ;;  %v843_v34 = vld [vmem:[#allocation5 + $0x128] sm:$0xff] }
  0x7a   : > { %v1905_v39 = vpack.c.bf16 %v843_v34, %v842_v33 }
  0x7b   : > { %1650 = vmatmul.mubr.f32.gmra.mrb[8].mxu0 %v2478_v23 }
  0x7c   : > { %1652 = vmatprep.mubr.msk.f32.mxu0 %vm2199_vm0, %v2200_v1  ;;  %1885 = vmatpush3.bf16.msra.mxu0 %v1884_v37 }
  0x7d   : > { %1887 = vmatprep.subr.bf16.mxu0 %v1886_v40  ;;  %v844_v40 = vld [vmem:[#allocation5 + $0x130] sm:$0xff] }
  0x7e   : > { %v1908_v46 = vpack.c.bf16 %v845_v41, %v844_v40  ;;  %v853_v40 = vld [vmem:[#allocation5 + $0x178] sm:$0xff] }
  0x7f   : > { %1653 = vmatmul.mubr.f32.gmra.mrb[10].mxu0 %v2483_v24 }
  0x80   : > { %1655 = vmatprep.mubr.msk.f32.mxu0 %vm2199_vm0, %v2200_v1  ;;  %1889 = vmatpush3.bf16.msra.mxu0 %v1888_v45 }
  0x81   : > { %1891 = vmatprep.subr.bf16.mxu0 %v1890_v49 }
  0x83   : > { %1656 = vmatmul.mubr.f32.gmra.mrb[12].mxu0 %v2488_v25 }
  0x84   : > { %1658 = vmatprep.mubr.msk.f32.mxu0 %vm2199_vm0, %v2200_v1  ;;  %1893 = vmatpush3.bf16.msra.mxu0 %v1892_v54  ;;  %v848_v54 = vld [vmem:[#allocation5 + $0x150] sm:$0xff] }
  0x85   : > { %1895 = vmatprep.subr.bf16.mxu0 %v1894_v58  ;;  %v1914_v60 = vpack.c.bf16 %v849_v55, %v848_v54 }
  0x87   : > { %1659 = vmatmul.mubr.f32.gmra.mrb[14].mxu0 %v2493_v26 }
  0x88   : > { %1661 = vmatprep.mubr.msk.f32.mxu0 %vm2199_vm0, %v2200_v1  ;;  %1897 = vmatpush3.bf16.msra.mxu0 %v1896_v61 }
  0x8b   : > { %1662 = vmatmul.mubr.f32.gmra.mrb[16].mxu0 %v2498_v27 }
  0x8c   : > { %1664 = vmatprep.mubr.msk.f32.mxu0 %vm2199_vm0, %v2200_v1 }
  0x8f   : > { %1665 = vmatmul.mubr.f32.gmra.mrb[18].mxu0 %v2503_v28 }
  0x90   : > { %1667 = vmatprep.mubr.msk.f32.mxu0 %vm2199_vm0, %v2200_v1 }
  0x93   : > { %1668 = vmatmul.mubr.f32.gmra.mrb[20].mxu0 %v2508_v29 }
  0x94   : > { %1670 = vmatprep.mubr.msk.f32.mxu0 %vm2199_vm0, %v2200_v1 }
  0x97   : > { %1671 = vmatmul.mubr.f32.gmra.mrb[22].mxu0 %v2513_v30 }
  0x98   : > { %1673 = vmatprep.mubr.msk.f32.mxu0 %vm2199_vm0, %v2200_v1 }
  0x9b   : > { %1674 = vmatmul.mubr.f32.gmra.mrb[24].mxu0 %v2518_v31 }
 0x13e   : > { %v472_v63 = vpop.f32.mrb[0].mxu0 }
 0x13f   : > { %v473_v3 = vadd.f32 %v2526_v62, %v472_v63  ;;  %v1639_v4 = vpop.f32.mrb[1].mxu0 }
 0x141   : > { %v536_v7 = vmul.f32 0.01, %v473_v3 }
 0x142   : > { %v477_v8 = vpop.f32.mrb[2].mxu0 }
 0x143   : > { %v549_v10 = vmax.f32 %v473_v3, %v536_v7  ;;  %v478_v11 = vadd.f32 %v2526_v62, %v477_v8  ;;  %v1642_v12 = vpop.f32.mrb[3].mxu0 }
 0x145   : > { %v537_v17 = vmul.f32 0.01, %v478_v11  ;;  %1709 = vmatmul.mubr.f32.vlgmr.msra.gmra.mrb[0].mxu1 %v549_v10  ;;  %925 = vmatprep.mubr.f32.mxu0 %v549_v10 }
 0x146   : > { %v482_v18 = vpop.f32.mrb[4].mxu0  ;;  %1711 = vmatprep.mubr.msk.f32.mxu1 %vm2199_vm0, %v2200_v1  ;;  %926 = vmatmul.mubr.f32.vlgmr.msra.gmra.mrb[26].mxu0 %v2457_v2 }
 0x147   : > { %v550_v19 = vmax.f32 %v478_v11, %v537_v17  ;;  %v483_v20 = vadd.f32 %v2526_v62, %v482_v18  ;;  %v1645_v22 = vpop.f32.mrb[5].mxu0  ;;  %1900 = vmatpush3.bf16.msra.mxu1 %v1899_v13 }
 0x148   : > { %1901 = vmatprep.subr.bf16.mxu1 %v2198_v0 }
 0x149   : > { %v538_v35 = vmul.f32 0.01, %v483_v20  ;;  %1712 = vmatmul.mubr.f32.gmra.mrb[2].mxu1 %v550_v19  ;;  %930 = vmatprep.mubr.f32.mxu0 %v550_v19 }
 0x14a   : > { %v487_v36 = vpop.f32.mrb[6].mxu0  ;;  %1714 = vmatprep.mubr.msk.f32.mxu1 %vm2199_vm0, %v2200_v1  ;;  %931 = vmatmul.mubr.f32.gmra.mrb[28].mxu0 %v2463_v9 }
 0x14b   : > { %v551_v2 = vmax.f32 %v483_v20, %v538_v35  ;;  %v488_v37 = vadd.f32 %v2526_v62, %v487_v36  ;;  %v1648_v38 = vpop.f32.mrb[7].mxu0  ;;  %1903 = vmatpush3.bf16.msra.mxu1 %v1902_v32 }
 0x14c   : > { %1904 = vmatprep.subr.bf16.mxu1 %v2198_v0  ;;  %v851_v38 = vld [vmem:[#allocation5 + $0x168] sm:$0xff] }
 0x14d   : > { %v539_v42 = vmul.f32 0.01, %v488_v37  ;;  %1715 = vmatmul.mubr.f32.gmra.mrb[4].mxu1 %v551_v2  ;;  %935 = vmatprep.mubr.f32.mxu0 %v551_v2 }
 0x14e   : > { %v492_v43 = vpop.f32.mrb[8].mxu0  ;;  %1717 = vmatprep.mubr.msk.f32.mxu1 %vm2199_vm0, %v2200_v1  ;;  %936 = vmatmul.mubr.f32.gmra.mrb[30].mxu0 %v2468_v16 }
 0x14f   : > { %v552_v9 = vmax.f32 %v488_v37, %v539_v42  ;;  %v493_v44 = vadd.f32 %v2526_v62, %v492_v43  ;;  %v1651_v45 = vpop.f32.mrb[9].mxu0  ;;  %1906 = vmatpush3.bf16.msra.mxu1 %v1905_v39  ;;  %v852_v39 = vld [vmem:[#allocation5 + $0x170] sm:$0xff] }
 0x150   : > { %1907 = vmatprep.subr.bf16.mxu1 %v2198_v0  ;;  %v1920_v41 = vpack.c.bf16 %v853_v40, %v852_v39 }
 0x151   : > { %v540_v49 = vmul.f32 0.01, %v493_v44  ;;  %1718 = vmatmul.mubr.f32.gmra.mrb[6].mxu1 %v552_v9  ;;  %940 = vmatprep.mubr.f32.mxu0 %v552_v9 }
 0x152   : > { %v497_v50 = vpop.f32.mrb[10].mxu0  ;;  %1720 = vmatprep.mubr.msk.f32.mxu1 %vm2199_vm0, %v2200_v1  ;;  %941 = vmatmul.mubr.f32.gmra.mrb[32].mxu0 %v2473_v21 }
 0x153   : > { %v553_v16 = vmax.f32 %v493_v44, %v540_v49  ;;  %v498_v51 = vadd.f32 %v2526_v62, %v497_v50  ;;  %v1654_v52 = vpop.f32.mrb[11].mxu0  ;;  %1909 = vmatpush3.bf16.msra.mxu1 %v1908_v46 }
 0x154   : > { %1910 = vmatprep.subr.bf16.mxu1 %v2198_v0 }
 0x155   : > { %v541_v56 = vmul.f32 0.01, %v498_v51  ;;  %1721 = vmatmul.mubr.f32.gmra.mrb[8].mxu1 %v553_v16  ;;  %945 = vmatprep.mubr.f32.mxu0 %v553_v16 }
 0x156   : > { %v502_v57 = vpop.f32.mrb[12].mxu0  ;;  %1723 = vmatprep.mubr.msk.f32.mxu1 %vm2199_vm0, %v2200_v1  ;;  %946 = vmatmul.mubr.f32.gmra.mrb[34].mxu0 %v2478_v23 }
 0x157   : > { %v554_v21 = vmax.f32 %v498_v51, %v541_v56  ;;  %v503_v58 = vadd.f32 %v2526_v62, %v502_v57  ;;  %v1657_v59 = vpop.f32.mrb[13].mxu0  ;;  %1912 = vmatpush3.bf16.msra.mxu1 %v1911_v53 }
 0x158   : > { %1913 = vmatprep.subr.bf16.mxu1 %v2198_v0 }
 0x159   : > { %v542_v61 = vmul.f32 0.01, %v503_v58  ;;  %1724 = vmatmul.mubr.f32.gmra.mrb[10].mxu1 %v554_v21  ;;  %950 = vmatprep.mubr.f32.mxu0 %v554_v21 }
 0x15a   : > { %v507_v63 = vpop.f32.mrb[14].mxu0  ;;  %1726 = vmatprep.mubr.msk.f32.mxu1 %vm2199_vm0, %v2200_v1  ;;  %951 = vmatmul.mubr.f32.gmra.mrb[36].mxu0 %v2483_v24 }
 0x15b   : > { %v555_v3 = vmax.f32 %v503_v58, %v542_v61  ;;  %v508_v23 = vadd.f32 %v2526_v62, %v507_v63  ;;  %v1660_v4 = vpop.f32.mrb[15].mxu0  ;;  %1915 = vmatpush3.bf16.msra.mxu1 %v1914_v60 }
 0x15c   : > { %1916 = vmatprep.subr.bf16.mxu1 %v2198_v0 }
 0x15d   : > { %v543_v5 = vmul.f32 0.01, %v508_v23  ;;  %1727 = vmatmul.mubr.f32.gmra.mrb[12].mxu1 %v555_v3  ;;  %955 = vmatprep.mubr.f32.mxu0 %v555_v3 }
 0x15e   : > { %v512_v6 = vpop.f32.mrb[16].mxu0  ;;  %1729 = vmatprep.mubr.msk.f32.mxu1 %vm2199_vm0, %v2200_v1  ;;  %956 = vmatmul.mubr.f32.gmra.mrb[38].mxu0 %v2488_v25 }
 0x15f   : > { %v556_v7 = vmax.f32 %v508_v23, %v543_v5  ;;  %v513_v8 = vadd.f32 %v2526_v62, %v512_v6  ;;  %v1663_v24 = vpop.f32.mrb[17].mxu0 }
 0x161   : > { %v544_v10 = vmul.f32 0.01, %v513_v8  ;;  %1730 = vmatmul.mubr.f32.gmra.mrb[14].mxu1 %v556_v7  ;;  %960 = vmatprep.mubr.f32.mxu0 %v556_v7 }
 0x162   : > { %v517_v11 = vpop.f32.mrb[18].mxu0  ;;  %1732 = vmatprep.mubr.msk.f32.mxu1 %vm2199_vm0, %v2200_v1  ;;  %961 = vmatmul.mubr.f32.gmra.mrb[40].mxu0 %v2493_v26 }
 0x163   : > { %v557_v12 = vmax.f32 %v513_v8, %v544_v10  ;;  %v518_v13 = vadd.f32 %v2526_v62, %v517_v11  ;;  %v1666_v14 = vpop.f32.mrb[19].mxu0 }
 0x165   : > { %v545_v15 = vmul.f32 0.01, %v518_v13  ;;  %1733 = vmatmul.mubr.f32.gmra.mrb[16].mxu1 %v557_v12  ;;  %965 = vmatprep.mubr.f32.mxu0 %v557_v12 }
 0x166   : > { %v522_v25 = vpop.f32.mrb[20].mxu0  ;;  %1735 = vmatprep.mubr.msk.f32.mxu1 %vm2199_vm0, %v2200_v1  ;;  %966 = vmatmul.mubr.f32.gmra.mrb[42].mxu0 %v2498_v27 }
 0x167   : > { %v558_v17 = vmax.f32 %v518_v13, %v545_v15  ;;  %v523_v18 = vadd.f32 %v2526_v62, %v522_v25  ;;  %v1669_v19 = vpop.f32.mrb[21].mxu0 }
 0x169   : > { %v546_v20 = vmul.f32 0.01, %v523_v18  ;;  %1736 = vmatmul.mubr.f32.gmra.mrb[18].mxu1 %v558_v17  ;;  %970 = vmatprep.mubr.f32.mxu0 %v558_v17 }
 0x16a   : > { %v527_v26 = vpop.f32.mrb[22].mxu0  ;;  %1738 = vmatprep.mubr.msk.f32.mxu1 %vm2199_vm0, %v2200_v1  ;;  %971 = vmatmul.mubr.f32.gmra.mrb[44].mxu0 %v2503_v28 }
 0x16b   : > { %v559_v22 = vmax.f32 %v523_v18, %v546_v20  ;;  %v528_v32 = vadd.f32 %v2526_v62, %v527_v26  ;;  %v1672_v33 = vpop.f32.mrb[23].mxu0 }
 0x16d   : > { %v547_v34 = vmul.f32 0.01, %v528_v32  ;;  %1739 = vmatmul.mubr.f32.gmra.mrb[20].mxu1 %v559_v22  ;;  %975 = vmatprep.mubr.f32.mxu0 %v559_v22 }
 0x16e   : > { %v532_v27 = vpop.f32.mrb[24].mxu0  ;;  %1741 = vmatprep.mubr.msk.f32.mxu1 %vm2199_vm0, %v2200_v1  ;;  %976 = vmatmul.mubr.f32.gmra.mrb[46].mxu0 %v2508_v29  ;;  %v850_v29 = vld [vmem:[#allocation5 + $0x160] sm:$0xff] }
 0x16f   : > { %v560_v35 = vmax.f32 %v528_v32, %v547_v34  ;;  %v533_v36 = vadd.f32 %v2526_v62, %v532_v27  ;;  %v1675_v2 = vpop.f32.mrb[25].mxu0  ;;  %v1917_v62 = vpack.c.bf16 %v851_v38, %v850_v29 }
 0x171   : > { %v548_v37 = vmul.f32 0.01, %v533_v36  ;;  %1742 = vmatmul.mubr.f32.gmra.mrb[22].mxu1 %v560_v35  ;;  %980 = vmatprep.mubr.f32.mxu0 %v560_v35 }
 0x172   : > { %1744 = vmatprep.mubr.msk.f32.mxu1 %vm2199_vm0, %v2200_v1  ;;  %981 = vmatmul.mubr.f32.gmra.mrb[48].mxu0 %v2513_v30  ;;  %v2590_v30 = vld [vmem:[%s2781_s4] ss:$0 sm:$0xff] }
 0x173   : > { %v561_v28 = vmax.f32 %v533_v36, %v548_v37  ;;  %1918 = vmatpush3.bf16.msra.mxu1 %v1917_v62 }
 0x174   : > { %1919 = vmatprep.subr.bf16.mxu1 %v2198_v0 }
 0x175   : > { %1745 = vmatmul.mubr.f32.gmra.mrb[24].mxu1 %v561_v28  ;;  %985 = vmatprep.mubr.f32.mxu0 %v561_v28 }
 0x176   : > { %1779 = vmatprep.mubr.msk.f32.mxu1 %vm2199_vm0, %v2200_v1  ;;  %986 = vmatmul.mubr.f32.gmra.mrb[50].mxu0 %v2518_v31 }
 0x177   : > { %1921 = vmatpush3.bf16.msra.mxu1 %v1920_v41 }
 0x218   : > { %v664_v42 = vpop.f32.mrb[0].mxu1 }
 0x219   : > { %v665_v43 = vadd.f32 %v2590_v30, %v664_v42  ;;  %v1710_v9 = vpop.f32.mrb[1].mxu1  ;;  %v1537_v31 = vpop.f32.mrb[26].mxu0 }
 0x21a   : > { %v1538_v44 = vpop.f32.mrb[27].mxu0 }
 0x21b   : > { %v728_v45 = vmul.f32 0.01, %v665_v43  ;;  %v2593_v46 = vadd.f32 %v1538_v44, %v1537_v31 }
 0x21c   : > { %v669_v47 = vpop.f32.mrb[2].mxu1 }
 0x21d   : > { %v741_v0 = vmax.f32 %v665_v43, %v728_v45  ;;  %v670_v48 = vadd.f32 %v2590_v30, %v669_v47  ;;  %v1713_v49 = vpop.f32.mrb[3].mxu1  ;;  %v1540_v50 = vpop.f32.mrb[28].mxu0 }
 0x21e   : > { %v1541_v16 = vpop.f32.mrb[29].mxu0 }
 0x21f   : > { %v729_v51 = vmul.f32 0.01, %v670_v48  ;;  %1780 = vmatmul.mubr.f32.vlgmr.msra.gmra.mrb[26].mxu1 %v741_v0  ;;  %v2596_v52 = vadd.f32 %v1541_v16, %v1540_v50 }
 0x220   : > { %v674_v53 = vpop.f32.mrb[4].mxu1  ;;  %1782 = vmatprep.mubr.msk.f32.mxu1 %vm2199_vm0, %v2200_v1 }
 0x221   : > { %v742_v54 = vmax.f32 %v670_v48, %v729_v51  ;;  %v675_v55 = vadd.f32 %v2590_v30, %v674_v53  ;;  %v1716_v56 = vpop.f32.mrb[5].mxu1  ;;  %v1543_v49 = vpop.f32.mrb[30].mxu0 }
 0x222   : > { %v1544_v50 = vpop.f32.mrb[31].mxu0 }
 0x223   : > { %v730_v57 = vmul.f32 0.01, %v675_v55  ;;  %1783 = vmatmul.mubr.f32.gmra.mrb[28].mxu1 %v742_v54  ;;  %v1545_v16 = vadd.f32 %v1544_v50, %v1543_v49 }
 0x224   : > { %v679_v21 = vpop.f32.mrb[6].mxu1  ;;  %1785 = vmatprep.mubr.msk.f32.mxu1 %vm2199_vm0, %v2200_v1 }
 0x225   : > { %v743_v58 = vmax.f32 %v675_v55, %v730_v57  ;;  %v680_v59 = vadd.f32 %v2590_v30, %v679_v21  ;;  %v1719_v60 = vpop.f32.mrb[7].mxu1  ;;  %v1546_v51 = vpop.f32.mrb[32].mxu0 }
 0x226   : > { %v1547_v53 = vpop.f32.mrb[33].mxu0 }
 0x227   : > { %v731_v61 = vmul.f32 0.01, %v680_v59  ;;  %1786 = vmatmul.mubr.f32.gmra.mrb[30].mxu1 %v743_v58  ;;  %v1548_v54 = vadd.f32 %v1547_v53, %v1546_v51 }
 0x228   : > { %v684_v63 = vpop.f32.mrb[8].mxu1  ;;  %1788 = vmatprep.mubr.msk.f32.mxu1 %vm2199_vm0, %v2200_v1 }
 0x229   : > { %v744_v3 = vmax.f32 %v680_v59, %v731_v61  ;;  %v685_v23 = vadd.f32 %v2590_v30, %v684_v63  ;;  %v1722_v4 = vpop.f32.mrb[9].mxu1  ;;  %v1549_v55 = vpop.f32.mrb[34].mxu0 }
 0x22a   : > { %v1550_v56 = vpop.f32.mrb[35].mxu0 }
 0x22b   : > { %v732_v5 = vmul.f32 0.01, %v685_v23  ;;  %1789 = vmatmul.mubr.f32.gmra.mrb[32].mxu1 %v744_v3  ;;  %v1551_v57 = vadd.f32 %v1550_v56, %v1549_v55 }
 0x22c   : > { %v689_v6 = vpop.f32.mrb[10].mxu1  ;;  %1791 = vmatprep.mubr.msk.f32.mxu1 %vm2199_vm0, %v2200_v1 }
 0x22d   : > { %v745_v7 = vmax.f32 %v685_v23, %v732_v5  ;;  %v690_v8 = vadd.f32 %v2590_v30, %v689_v6  ;;  %v1725_v24 = vpop.f32.mrb[11].mxu1  ;;  %v1552_v21 = vpop.f32.mrb[36].mxu0 }
 0x22e   : > { %v1553_v58 = vpop.f32.mrb[37].mxu0 }
 0x22f   : > { %v733_v10 = vmul.f32 0.01, %v690_v8  ;;  %1792 = vmatmul.mubr.f32.gmra.mrb[34].mxu1 %v745_v7 }
 0x230   : > { %v694_v11 = vpop.f32.mrb[12].mxu1  ;;  %1794 = vmatprep.mubr.msk.f32.mxu1 %vm2199_vm0, %v2200_v1 }
 0x231   : > { %v746_v12 = vmax.f32 %v690_v8, %v733_v10  ;;  %v695_v13 = vadd.f32 %v2590_v30, %v694_v11  ;;  %v1728_v14 = vpop.f32.mrb[13].mxu1  ;;  %v1555_v59 = vpop.f32.mrb[38].mxu0 }
 0x232   : > { %v1556_v60 = vpop.f32.mrb[39].mxu0 }
 0x233   : > { %v734_v15 = vmul.f32 0.01, %v695_v13  ;;  %1795 = vmatmul.mubr.f32.gmra.mrb[36].mxu1 %v746_v12  ;;  %v1557_v61 = vadd.f32 %v1556_v60, %v1555_v59 }
 0x234   : > { %v699_v25 = vpop.f32.mrb[14].mxu1  ;;  %1797 = vmatprep.mubr.msk.f32.mxu1 %vm2199_vm0, %v2200_v1 }
 0x235   : > { %v747_v17 = vmax.f32 %v695_v13, %v734_v15  ;;  %v700_v18 = vadd.f32 %v2590_v30, %v699_v25  ;;  %v1731_v19 = vpop.f32.mrb[15].mxu1  ;;  %v1558_v63 = vpop.f32.mrb[40].mxu0 }
 0x236   : > { %v1559_v3 = vpop.f32.mrb[41].mxu0 }
 0x237   : > { %v735_v20 = vmul.f32 0.01, %v700_v18  ;;  %1798 = vmatmul.mubr.f32.gmra.mrb[38].mxu1 %v747_v17 }
 0x238   : > { %v704_v26 = vpop.f32.mrb[16].mxu1  ;;  %1800 = vmatprep.mubr.msk.f32.mxu1 %vm2199_vm0, %v2200_v1 }
 0x239   : > { %v748_v22 = vmax.f32 %v700_v18, %v735_v20  ;;  %v705_v32 = vadd.f32 %v2590_v30, %v704_v26  ;;  %v1734_v33 = vpop.f32.mrb[17].mxu1  ;;  %v1561_v23 = vpop.f32.mrb[42].mxu0  ;;  %v2641_v18 = vld [vmem:[%s2783_s6] ss:$0 sm:$0xff] }
 0x23a   : > { %v1562_v4 = vpop.f32.mrb[43].mxu0  ;;  %v928_v19 = vadd.f32 %v2593_v46, %v2641_v18  ;;  %v938_v46 = vadd.f32 %v1545_v16, %v2641_v18 }
 0x23b   : > { %v736_v34 = vmul.f32 0.01, %v705_v32  ;;  %1801 = vmatmul.mubr.f32.gmra.mrb[40].mxu1 %v748_v22  ;;  %v1563_v5 = vadd.f32 %v1562_v4, %v1561_v23 }
 0x23c   : > { %v709_v27 = vpop.f32.mrb[18].mxu1  ;;  %1803 = vmatprep.mubr.msk.f32.mxu1 %vm2199_vm0, %v2200_v1 }
 0x23d   : > { %v749_v35 = vmax.f32 %v705_v32, %v736_v34  ;;  %v710_v36 = vadd.f32 %v2590_v30, %v709_v27  ;;  %v1737_v2 = vpop.f32.mrb[19].mxu1  ;;  %v1564_v6 = vpop.f32.mrb[44].mxu0  ;;  %v933_v32 = vadd.f32 %v2596_v52, %v2641_v18  ;;  %v943_v52 = vadd.f32 %v1548_v54, %v2641_v18 }
 0x23e   : > { %v1565_v7 = vpop.f32.mrb[45].mxu0  ;;  %v968_v16 = vadd.f32 %v1563_v5, %v2641_v18 }
 0x23f   : > { %v737_v37 = vmul.f32 0.01, %v710_v36  ;;  %1804 = vmatmul.mubr.f32.gmra.mrb[42].mxu1 %v749_v35  ;;  %v1566_v8 = vadd.f32 %v1565_v7, %v1564_v6 }
 0x240   : > { %v714_v28 = vpop.f32.mrb[20].mxu1  ;;  %1806 = vmatprep.mubr.msk.f32.mxu1 %vm2199_vm0, %v2200_v1 }
 0x241   : > { %v750_v29 = vmax.f32 %v710_v36, %v737_v37  ;;  %v715_v38 = vadd.f32 %v2590_v30, %v714_v28  ;;  %v1740_v62 = vpop.f32.mrb[21].mxu1  ;;  %v1567_v24 = vpop.f32.mrb[46].mxu0  ;;  %v973_v55 = vadd.f32 %v1566_v8, %v2641_v18 }
 0x242   : > { %v1568_v10 = vpop.f32.mrb[47].mxu0 }
 0x243   : > { %v738_v39 = vmul.f32 0.01, %v715_v38  ;;  %1807 = vmatmul.mubr.f32.gmra.mrb[44].mxu1 %v750_v29  ;;  %v1569_v11 = vadd.f32 %v1568_v10, %v1567_v24 }
 0x244   : > { %v719_v40 = vpop.f32.mrb[22].mxu1  ;;  %1809 = vmatprep.mubr.msk.f32.mxu1 %vm2199_vm0, %v2200_v1 }
 0x245   : > { %v751_v41 = vmax.f32 %v715_v38, %v738_v39  ;;  %v720_v42 = vadd.f32 %v2590_v30, %v719_v40  ;;  %v1743_v43 = vpop.f32.mrb[23].mxu1  ;;  %v1570_v12 = vpop.f32.mrb[48].mxu0  ;;  %v948_v38 = vadd.f32 %v1551_v57, %v2641_v18 }
 0x246   : > { %v1571_v13 = vpop.f32.mrb[49].mxu0 }
 0x247   : > { %v739_v9 = vmul.f32 0.01, %v720_v42  ;;  %1810 = vmatmul.mubr.f32.gmra.mrb[46].mxu1 %v751_v41  ;;  %v2633_v14 = vadd.f32 %v1571_v13, %v1570_v12 }
 0x248   : > { %v724_v31 = vpop.f32.mrb[24].mxu1  ;;  %1812 = vmatprep.mubr.msk.f32.mxu1 %vm2199_vm0, %v2200_v1 }
 0x249   : > { %v752_v44 = vmax.f32 %v720_v42, %v739_v9  ;;  %v725_v45 = vadd.f32 %v2590_v30, %v724_v31  ;;  %v1746_v47 = vpop.f32.mrb[25].mxu1  ;;  %v1554_v30 = vadd.f32 %v1553_v58, %v1552_v21  ;;  %v1573_v15 = vpop.f32.mrb[50].mxu0  ;;  %v958_v31 = vadd.f32 %v1557_v61, %v2641_v18 }
 0x24a   : > { %v1574_v25 = vpop.f32.mrb[51].mxu0  ;;  %v978_v58 = vadd.f32 %v1569_v11, %v2641_v18  ;;  %v983_v61 = vadd.f32 %v2633_v14, %v2641_v18 }
 0x24b   : > { %v740_v0 = vmul.f32 0.01, %v725_v45  ;;  %1813 = vmatmul.mubr.f32.gmra.mrb[48].mxu1 %v752_v44  ;;  %v2635_v17 = vadd.f32 %v1574_v25, %v1573_v15  ;;  %v953_v41 = vadd.f32 %v1554_v30, %v2641_v18 }
 0x24c   : > { %1815 = vmatprep.mubr.msk.f32.mxu1 %vm2199_vm0, %v2200_v1  ;;  %v1560_v1 = vadd.f32 %v1559_v3, %v1558_v63 }
 0x24d   : > { %v753_v48 = vmax.f32 %v725_v45, %v740_v0  ;;  %v988_v23 = vadd.f32 %v2635_v17, %v2641_v18 }
 0x24e   : > { %v963_v0 = vadd.f32 %v1560_v1, %v2641_v18 }
 0x24f   : > { %1816 = vmatmul.mubr.f32.gmra.mrb[50].mxu1 %v753_v48 }
 0x2f2   : > { %v1057_v20 = vpop.f32.mrb[26].mxu1 }
 0x2f3   : > { %v1058_v26 = vadd.f32 %v1057_v20, %v928_v19  ;;  %v1781_v22 = vpop.f32.mrb[27].mxu1 }
 0x2f5   : > { %1122 = vst.msk [vmem:[%s2647_s12] sm:$0xff] %vm1121_vm2, %v1058_v26 }
 0x2f6   : > { %v1062_v33 = vpop.f32.mrb[28].mxu1 }
 0x2f7   : > { %v1063_v34 = vadd.f32 %v1062_v33, %v933_v32  ;;  %v1784_v27 = vpop.f32.mrb[29].mxu1 }
 0x2f9   : > { %1123 = vst.msk [vmem:[%s2647_s12 + $0x8] sm:$0xff] %vm1121_vm2, %v1063_v34 }
 0x2fa   : > { %v1067_v35 = vpop.f32.mrb[30].mxu1 }
 0x2fb   : > { %v1068_v36 = vadd.f32 %v1067_v35, %v938_v46  ;;  %v1787_v2 = vpop.f32.mrb[31].mxu1 }
 0x2fd   : > { %1124 = vst.msk [vmem:[%s2647_s12 + $0x10] sm:$0xff] %vm1121_vm2, %v1068_v36 }
 0x2fe   : > { %v1072_v37 = vpop.f32.mrb[32].mxu1 }
 0x2ff   : > { %v1073_v28 = vadd.f32 %v1072_v37, %v943_v52  ;;  %v1790_v29 = vpop.f32.mrb[33].mxu1 }
 0x301   : > { %1125 = vst.msk [vmem:[%s2647_s12 + $0x18] sm:$0xff] %vm1121_vm2, %v1073_v28 }
 0x302   : > { %v1077_v62 = vpop.f32.mrb[34].mxu1 }
 0x303   : > { %v1078_v39 = vadd.f32 %v1077_v62, %v948_v38  ;;  %v1793_v40 = vpop.f32.mrb[35].mxu1 }
 0x305   : > { %1126 = vst.msk [vmem:[%s2647_s12 + $0x20] sm:$0xff] %vm1121_vm2, %v1078_v39 }
 0x306   : > { %v1082_v42 = vpop.f32.mrb[36].mxu1 }
 0x307   : > { %v1083_v43 = vadd.f32 %v1082_v42, %v953_v41  ;;  %v1796_v9 = vpop.f32.mrb[37].mxu1 }
 0x309   : > { %1127 = vst.msk [vmem:[%s2647_s12 + $0x28] sm:$0xff] %vm1121_vm2, %v1083_v43 }
 0x30a   : > { %v1087_v44 = vpop.f32.mrb[38].mxu1 }
 0x30b   : > { %v1088_v45 = vadd.f32 %v1087_v44, %v958_v31  ;;  %v1799_v47 = vpop.f32.mrb[39].mxu1 }
 0x30d   : > { %1128 = vst.msk [vmem:[%s2647_s12 + $0x30] sm:$0xff] %vm1121_vm2, %v1088_v45 }
 0x30e   : > { %v1092_v48 = vpop.f32.mrb[40].mxu1 }
 0x30f   : > { %v1093_v49 = vadd.f32 %v1092_v48, %v963_v0  ;;  %v1802_v50 = vpop.f32.mrb[41].mxu1 }
 0x311   : > { %1129 = vst.msk [vmem:[%s2647_s12 + $0x38] sm:$0xff] %vm1121_vm2, %v1093_v49 }
 0x312   : > { %v1097_v51 = vpop.f32.mrb[42].mxu1 }
 0x313   : > { %v1098_v53 = vadd.f32 %v1097_v51, %v968_v16  ;;  %v1805_v54 = vpop.f32.mrb[43].mxu1 }
 0x315   : > { %1130 = vst.msk [vmem:[%s2647_s12 + $0x40] sm:$0xff] %vm1121_vm2, %v1098_v53 }
 0x316   : > { %v1102_v56 = vpop.f32.mrb[44].mxu1 }
 0x317   : > { %v1103_v57 = vadd.f32 %v1102_v56, %v973_v55  ;;  %v1808_v21 = vpop.f32.mrb[45].mxu1 }
 0x319   : > { %1131 = vst.msk [vmem:[%s2647_s12 + $0x48] sm:$0xff] %vm1121_vm2, %v1103_v57 }
 0x31a   : > { %v1107_v30 = vpop.f32.mrb[46].mxu1 }
 0x31b   : > { %v1108_v59 = vadd.f32 %v1107_v30, %v978_v58  ;;  %v1811_v60 = vpop.f32.mrb[47].mxu1 }
 0x31d   : > { %1132 = vst.msk [vmem:[%s2647_s12 + $0x50] sm:$0xff] %vm1121_vm2, %v1108_v59 }
 0x31e   : > { %v1112_v63 = vpop.f32.mrb[48].mxu1 }
 0x31f   : > { %v1113_v3 = vadd.f32 %v1112_v63, %v983_v61  ;;  %v1814_v1 = vpop.f32.mrb[49].mxu1  ;;  %1141 = sbr.rel (!%p2795_p12) target bundleno = 867 (0x363), region = 60 }
 0x321   : > { %1133 = vst.msk [vmem:[%s2647_s12 + $0x58] sm:$0xff] %vm1121_vm2, %v1113_v3 }
 0x322   : > { %v1117_v4 = vpop.f32.mrb[50].mxu1 }
 0x323   : > { %v1118_v5 = vadd.f32 %v1117_v4, %v988_v23  ;;  %v1817_v6 = vpop.f32.mrb[51].mxu1 }
 0x325   : > { %1134 = vst.msk [vmem:[%s2647_s12 + $0x60] sm:$0xff] %vm1121_vm2, %v1118_v5 }
 0x326   : > { %s2803_s24 = smov (!%p1144_p13, %s1143_s24), 13 }
 0x327   : > { %s1434_s26 = sshll.u32 %s2803_s24, 7 }
 0x328   : > { %p1437_p0 = scmp.eq.s32.totalorder %s1434_s26, 0 }
 0x329   : > { %2038 = sdivrem.u32 (!%p1437_p0), %s2803_s24, 13 }
 0x32a   : > { %1152 = sbr.rel (%p1437_p0) target bundleno = 867 (0x363), region = 64 }
 0x332   : > { %s2701_s9 = spop.drf %2038 }
 0x333   : > { %p1438_p1 = scmp.le.s32.totalorder %s2701_s9, 0 }
 0x334   : > { %s2796_s27 = smov (!%p1438_p1), %s2695_s15  ;;  %s2797_s13 = smov (!%p1438_p1), %s2647_s12 }
 0x335   : > { %1360 = sbr.rel (%p1438_p1) target bundleno = 838 (0x346), region = 141  ;;  %s2710_s29 = smov (!%p1438_p1), 0  }
 0x336   : > { %s2712_s30 = smov (!%p1438_p1), 0  }
 0x33c LB: >> { %v1240_v7 = vld [vmem:[%s2168_s13] sm:$0xff]  ;;  %v1242_v8 = vld [vmem:[%s2168_s13 + $0x8] sm:$0xff]  ;;  %v1244_v24 = vld [vmem:[%s2168_s13 + $0x10] sm:$0xff]  ;;  %s1266_s11 = sadd.s32 1, %s2172_s29  ;;  %s1234_s30 = sadd.s32 1, %s2176_s30   ;;  %s2176_s30 = sphi %s2712_s30, %s1234_s30   ;;  %s2172_s29 = sphi %s2710_s29, %s2798_s29   ;;  %s2168_s13 = sphi %s2797_s13, %s1271_s13   ;;  %s2164_s27 = sphi %s2796_s27, %s1272_s27  }
 0x33d   : >> { %1241 = vst [vmem:[%s2164_s27] sm:$0xff] %v1240_v7  ;;  %1243 = vst [vmem:[%s2164_s27 + $0x8] sm:$0xff] %v1242_v8  ;;  %v1246_v10 = vld [vmem:[%s2168_s13 + $0x18] sm:$0xff]  ;;  %v1248_v11 = vld [vmem:[%s2168_s13 + $0x20] sm:$0xff]  ;;  %p1267_p2 = scmp.ge.s32.totalorder %s1266_s11, %s2701_s9  ;;  %p1233_p3 = scmp.ge.s32.totalorder %s1234_s30, %s2701_s9 }
 0x33e   : >> { %1245 = vst [vmem:[%s2164_s27 + $0x10] sm:$0xff] %v1244_v24  ;;  %v1250_v12 = vld [vmem:[%s2168_s13 + $0x28] sm:$0xff]  ;;  %1247 = vst [vmem:[%s2164_s27 + $0x18] sm:$0xff] %v1246_v10  ;;  %v1252_v13 = vld [vmem:[%s2168_s13 + $0x30] sm:$0xff] }
 0x33f   : >> { %1249 = vst [vmem:[%s2164_s27 + $0x20] sm:$0xff] %v1248_v11  ;;  %1251 = vst [vmem:[%s2164_s27 + $0x28] sm:$0xff] %v1250_v12  ;;  %v1254_v14 = vld [vmem:[%s2168_s13 + $0x38] sm:$0xff]  ;;  %v1256_v15 = vld [vmem:[%s2168_s13 + $0x40] sm:$0xff]  ;;  %s2805_s11 = smov (%p1267_p2, %s1266_s11), 0  ;;  %1236 = sbr.rel (!%p1233_p3) target bundleno = 828 (0x33c), region = 147 }
 0x340   : >> { %1253 = vst [vmem:[%s2164_s27 + $0x30] sm:$0xff] %v1252_v13  ;;  %1255 = vst [vmem:[%s2164_s27 + $0x38] sm:$0xff] %v1254_v14  ;;  %v1258_v25 = vld [vmem:[%s2168_s13 + $0x48] sm:$0xff]  ;;  %v1260_v17 = vld [vmem:[%s2168_s13 + $0x50] sm:$0xff]  ;;  %s1269_s14 = smul.u32 104, %s2805_s11  ;;  %s2798_s29 = smov %s2805_s11 }
 0x341   : >> { %1257 = vst [vmem:[%s2164_s27 + $0x40] sm:$0xff] %v1256_v15  ;;  %v1262_v18 = vld [vmem:[%s2168_s13 + $0x58] sm:$0xff]  ;;  %1259 = vst [vmem:[%s2164_s27 + $0x48] sm:$0xff] %v1258_v25  ;;  %v1264_v19 = vld [vmem:[%s2168_s13 + $0x60] sm:$0xff] }
 0x342   : >> { %1261 = vst [vmem:[%s2164_s27 + $0x50] sm:$0xff] %v1260_v17  ;;  %1263 = vst [vmem:[%s2164_s27 + $0x58] sm:$0xff] %v1262_v18  ;;  %s1271_s13 = scalar_lea.vmem %s2647_s12, %s1269_s14 [#allocation7]  }
 0x343   : >> { %1265 = vst [vmem:[%s2164_s27 + $0x60] sm:$0xff] %v1264_v19  ;;  %s1272_s27 = scalar_lea.vmem %s2695_s15, %s1269_s14  }
 0x346 PF: > { %2040 = sdivrem.u32 %s2803_s24, 13 }
 0x347   : > { %s1439_s16 = smul.u32 104, %s2701_s9 }
 0x349   : > { %s1277_s17 = scalar_lea.vmem %s2647_s12, %s1439_s16 [#allocation7]   ;;  %s1279_s18 = scalar_lea.vmem %s2695_s15, %s1439_s16  }
 0x34f   : > { %s2041_s19 = spop.drf %2040 }
 0x350   : > { %p1441_p5 = scmp.le.s32.totalorder %s2041_s19, 0 }
 0x351   : > { %s2178_s20 = smov (!%p1441_p5), %s1279_s18   ;;  %s2182_s21 = smov (!%p1441_p5), %s1277_s17  }
 0x352   : > { %1374 = sbr.rel (%p1441_p5) target bundleno = 867 (0x363), region = 152  ;;  %s2186_s22 = smov (!%p1441_p5), 0  }
 0x353   : > { %s2190_s23 = smov (!%p1441_p5), 0  }
 0x359 LB: >> { %v1289_v20 = vld [vmem:[%s2184_s21] sm:$0xff]  ;;  %s1291_s10 = sadd.s32 1, %s2188_s22  ;;  %s1283_s23 = sadd.s32 1, %s2192_s23   ;;  %s2192_s23 = sphi %s2190_s23, %s1283_s23   ;;  %s2188_s22 = sphi %s2186_s22, %s2187_s22   ;;  %s2184_s21 = sphi %s2182_s21, %s1296_s21   ;;  %s2180_s20 = sphi %s2178_s20, %s1297_s20  }
 0x35a   : >> { %1290 = vst [vmem:[%s2180_s20] sm:$0xff] %v1289_v20  ;;  %p1292_p8 = scmp.ge.s32.totalorder %s1291_s10, %s2041_s19  ;;  %p1282_p10 = scmp.ge.s32.totalorder %s1283_s23, %s2041_s19 }
 0x35c   : >> { %s2807_s10 = smov (%p1292_p8, %s1291_s10), 0  ;;  %1285 = sbr.rel (!%p1282_p10) target bundleno = 857 (0x359), region = 158 }
 0x35d   : >> { %s1442_s12 = sshll.u32 %s2807_s10, 3  ;;  %s2187_s22 = smov %s2807_s10  }
 0x35e   : >> { %s1296_s21 = scalar_lea.vmem %s1277_s17, %s1442_s12 [#allocation7]   ;;  %s1297_s20 = scalar_lea.vmem %s1279_s18, %s1442_s12  }
 0x363 PF: > { %p16_p4 = scmp.ge.s32.totalorder %s2256_s28, 4   ;;  %s2799_s24 = smov %s2156_s25 }
 0x364   : > { %s2800_s25 = smov %s2264_s8  ;;  %s2801_s26 = smov %s2256_s28 }
 0x365   :  { %18 = sbr.rel (!%p16_p4) target bundleno = 3 (0x3), region = 169 }
 0x36c   :  { %1313 = vsyncpa [#allocation4], 1 }
 0x36d   :  { %1315 = vsyncpa [#allocation4 + $0x1], 1 }
 0x36e   :  { %1316 = vsyncpa [#allocation6], 1 }

</bundles_post_ra>
